<compile_context>
chip_gen: v7x
topology: tpu7x:2x2x1
jax: 0.10.0
libtpu: 0.0.40
codegen_flags: <defaults>
</compile_context>

<pallas_src>
from functools import partial

import jax
import jax.numpy as jnp
from jax.experimental import pallas as pl
from jax.experimental.pallas import tpu as pltpu

EPS = 1e-5

# Matmul operand dtype for the convolutions.  jnp.float32 is safe everywhere;
# jnp.bfloat16 is preferred on v6e/v7x (accumulation stays f32 either way).
CONV_DTYPE = jnp.float32


def resblock_kernel(inv_count, x_ref, w1b_ref, w2b_ref, pool_ref, poolt_ref,
                    mask_ref, g1_ref, b1_ref, g2_ref, b2_ref, o_ref):
    """Fused ResidualBlock forward on a flat, H-padded, lane-dense slab.

    inv_count: static Python float, 1 / (N*H*W)   (BN divisor)
    x_ref    : (R, WC) f32, R = N*(H+2); rows r=0 and r=H+1 of every image are 0
    w*b_ref  : (3, WC, WC) banded conv weights (one matrix per kernel row dh)
    pool_ref : (WC, C)  lane -> channel reduction matrix (ones at [w*C+c, c])
    poolt_ref: (C, WC)  channel -> lane broadcast matrix (pool^T)
    mask_ref : (R-2, 1) f32, 1.0 on valid conv-output rows, 0.0 on the
               cross-image interface rows of the flat batched conv
    g*/b*    : (1, C)   BN scale / shift
    o_ref    : (R, WC) f32 output in the same padded layout
    """
    R, WC = x_ref.shape
    Rm = R - 2
    conv_dtype = w1b_ref.dtype

    x = x_ref[...]                                  # (R, WC) f32
    m = mask_ref[...]                               # (Rm, 1)
    zero_row = jnp.zeros((1, WC), jnp.float32)

    def conv3x3(slab, band_ref):
        # One batched matmul per kernel row dh over the whole padded slab:
        #   z[t] = sum_dh slab[t + dh] @ band[dh],  t = 0 .. R-3
        a = slab.astype(conv_dtype)
        z = jnp.dot(a[0:Rm], band_ref[0], preferred_element_type=jnp.float32)
        z = z + jnp.dot(a[1:Rm + 1], band_ref[1],
                        preferred_element_type=jnp.float32)
        z = z + jnp.dot(a[2:Rm + 2], band_ref[2],
                        preferred_element_type=jnp.float32)
        return z                                    # (Rm, WC) f32

    def bn_scale_shift(zm, g_ref, b_ref):
        # Training-mode BatchNorm2d stats over N*H*W in a single pass.
        # `zm` is already masked, so padding/interface rows contribute zeros.
        lane_sum = jnp.sum(zm, axis=0, keepdims=True)          # (1, WC)
        lane_sq = jnp.sum(zm * zm, axis=0, keepdims=True)      # (1, WC)
        ch = jnp.dot(jnp.concatenate([lane_sum, lane_sq], axis=0),
                     pool_ref[...],
                     preferred_element_type=jnp.float32)       # (2, C)
        mean = ch[0:1] * inv_count                             # (1, C)
        var = jnp.maximum(ch[1:2] * inv_count - mean * mean, 0.0)
        s = g_ref[...] * jax.lax.rsqrt(var + EPS)              # (1, C)
        t = b_ref[...] - mean * s                              # (1, C)
        st = jnp.dot(jnp.concatenate([s, t], axis=0),
                     poolt_ref[...],
                     preferred_element_type=jnp.float32)       # (2, WC)
        return st[0:1], st[1:2]

    # ---- conv1 -> bn1 -> relu (batched over all images) ----
    z1 = conv3x3(x, w1b_ref) * m        # mask kills cross-image bleed rows
    s1, t1 = bn_scale_shift(z1, g1_ref, b1_ref)
    a1 = jnp.maximum(z1 * s1 + t1, 0.0) * m   # pad rows back to exactly 0
    a1_pad = jnp.concatenate([zero_row, a1, zero_row], axis=0)   # (R, WC)

    # ---- conv2 -> bn2 ----
    z2 = conv3x3(a1_pad, w2b_ref) * m
    s2, t2 = bn_scale_shift(z2, g2_ref, b2_ref)

    # ---- residual add + relu: one whole-slab store ----
    # Interface pad rows hold relu(t2) (the residual is 0 there); the wrapper
    # discards every pad row, so no extra masking work is spent on them.
    out_mid = jnp.maximum(x[1:R - 1] + (z2 * s2 + t2), 0.0)
    o_ref[...] = jnp.concatenate([zero_row, out_mid, zero_row],
                                 axis=0).astype(o_ref.dtype)


def _band_weights(w_hwio, width):
    """(3, 3, Cin, Cout) conv taps -> (3, W*Cin, W*Cout) banded matrices.

    band[dh][wi*Cin + ci, wo*Cout + co] = w[dh, wi - wo + 1, ci, co]
    when 0 <= wi - wo + 1 <= 2, else 0 (the zero band implements the
    W-direction zero padding for free).
    """
    kh, kw, cin, cout = w_hwio.shape
    wi = jnp.arange(width)[:, None]
    wo = jnp.arange(width)[None, :]
    dw = wi - wo + 1                                          # (W, W)
    valid = ((dw >= 0) & (dw < kw)).astype(w_hwio.dtype)
    dw_c = jnp.clip(dw, 0, kw - 1)
    taps = w_hwio[:, dw_c, :, :]                              # (3, W, W, Cin, Cout)
    taps = taps * valid[None, :, :, None, None]
    taps = jnp.transpose(taps, (0, 1, 3, 2, 4))               # (3, W, Cin, W, Cout)
    return taps.reshape(kh, width * cin, width * cout)


@jax.jit
def residual_block(x_nchw, w1, w2, g1, b1, g2, b2):
    N, C, H, W = x_nchw.shape
    WC = W * C
    Hp = H + 2
    R = N * Hp

    # The module only composes when in_channels == out_channels and stride == 1.
    assert w1.shape == (3, 3, C, C) and w2.shape == (3, 3, C, C), (
        "kernel assumes 3x3 convs with in_channels == out_channels, stride=1")
    # Lane-dense layout assumption (demo hits exactly 128 lanes).
    assert WC % 128 == 0, "kernel wants W*C to be a multiple of 128 lanes"

    # NHWC, fold (W, C) onto the lane axis, pad H once (2 rows / image), flatten.
    # NOTE: the NCHW<->NHWC boundary transposes could be dropped entirely if the
    # caller kept activations in (N, H, W*C) layout end-to-end across blocks.
    x_nhwc = jnp.transpose(x_nchw, (0, 2, 3, 1)).astype(jnp.float32)
    x_pad = jnp.pad(x_nhwc.reshape(N, H, WC),
                    ((0, 0), (1, 1), (0, 0))).reshape(R, WC)

    # Row-validity mask for the flat batched conv output (rows t = 0 .. R-3
    # correspond to padded rows q = t+1; valid iff 1 <= q mod Hp <= H).
    t = jnp.arange(R - 2)
    r = (t + 1) % Hp
    mask = ((r >= 1) & (r <= H)).astype(jnp.float32).reshape(R - 2, 1)

    w1b = _band_weights(w1.astype(jnp.float32), W).astype(CONV_DTYPE)  # (3, WC, WC)
    w2b = _band_weights(w2.astype(jnp.float32), W).astype(CONV_DTYPE)
    pool = jnp.tile(jnp.eye(C, dtype=jnp.float32), (W, 1))             # (WC, C)
    poolt = jnp.transpose(pool)                                        # (C, WC)

    out2d = pl.pallas_call(
        partial(resblock_kernel, 1.0 / float(N * H * W)),
        out_shape=jax.ShapeDtypeStruct((R, WC), jnp.float32),
        in_specs=[pl.BlockSpec(memory_space=pltpu.MemorySpace.VMEM)] * 10,
        out_specs=pl.BlockSpec(memory_space=pltpu.MemorySpace.VMEM),
    )(x_pad, w1b, w2b, pool, poolt, mask,
      g1.reshape(1, C).astype(jnp.float32), b1.reshape(1, C).astype(jnp.float32),
      g2.reshape(1, C).astype(jnp.float32), b2.reshape(1, C).astype(jnp.float32))

    out_nhwc = out2d.reshape(N, Hp, W, C)[:, 1:H + 1]
    return jnp.transpose(out_nhwc, (0, 3, 1, 2)).astype(x_nchw.dtype)


def reference(x_nchw, w1, w2, g1, b1, g2, b2):
    """Pure-JAX reference mirroring the PyTorch forward (training-mode BN)."""
    def conv(x, w_hwio):
        w_oihw = jnp.transpose(w_hwio, (3, 2, 0, 1))
        return jax.lax.conv_general_dilated(
            x, w_oihw, window_strides=(1, 1), padding='SAME',
            dimension_numbers=('NCHW', 'OIHW', 'NCHW'))

    def bn(y, g, b):
        mean = y.mean(axis=(0, 2, 3), keepdims=True)
        var = ((y - mean) ** 2).mean(axis=(0, 2, 3), keepdims=True)
        return ((y - mean) * jax.lax.rsqrt(var + EPS)
                * g.reshape(1, -1, 1, 1) + b.reshape(1, -1, 1, 1))

    out = jax.nn.relu(bn(conv(x_nchw, w1), g1, b1))
    out = bn(conv(out, w2), g2, b2)
    return jax.nn.relu(x_nchw + out)


if __name__ == "__main__":
    # Small deterministic config: batch=2, channels=8 (in==out), spatial=16, stride=1.
    # W*C = 128 -> fully lane-dense activations.
    N, C, H, W = 2, 8, 16, 16
    key = jax.random.PRNGKey(0)
    kx, k1, k2, kg1, kb1, kg2, kb2 = jax.random.split(key, 7)

    x = jax.random.normal(kx, (N, C, H, W), jnp.float32)
    w1 = jax.random.normal(k1, (3, 3, C, C), jnp.float32) * 0.1   # HWIO
    w2 = jax.random.normal(k2, (3, 3, C, C), jnp.float32) * 0.1   # HWIO
    g1 = 1.0 + 0.1 * jax.random.normal(kg1, (C,), jnp.float32)
    b1 = 0.1 * jax.random.normal(kb1, (C,), jnp.float32)
    g2 = 1.0 + 0.1 * jax.random.normal(kg2, (C,), jnp.float32)
    b2 = 0.1 * jax.random.normal(kb2, (C,), jnp.float32)

    out = residual_block(x, w1, w2, g1, b1, g2, b2)
    out = jax.block_until_ready(out)

    ref = reference(x, w1, w2, g1, b1, g2, b2)
    assert out.shape == (N, C, H, W), out.shape
    # NOTE: if CONV_DTYPE is set to bfloat16 (v6e/v7x), relax to ~2e-2.
    assert jnp.allclose(out, ref, rtol=1e-3, atol=5e-4), (
        float(jnp.max(jnp.abs(out - ref))))

    print("KERNEL_OK")
</pallas_src>

<mosaic_0001>
module attributes {stable_mosaic.version = 11 : i64} {
  func.func @resblock_kernel(%arg0: memref<36x128xf32, #tpu.memory_space<vmem>>, %arg1: memref<3x128x128xf32, #tpu.memory_space<vmem>>, %arg2: memref<3x128x128xf32, #tpu.memory_space<vmem>>, %arg3: memref<128x8xf32, #tpu.memory_space<vmem>>, %arg4: memref<8x128xf32, #tpu.memory_space<vmem>>, %arg5: memref<34x1xf32, #tpu.memory_space<vmem>>, %arg6: memref<1x8xf32, #tpu.memory_space<vmem>>, %arg7: memref<1x8xf32, #tpu.memory_space<vmem>>, %arg8: memref<1x8xf32, #tpu.memory_space<vmem>>, %arg9: memref<1x8xf32, #tpu.memory_space<vmem>>, %arg10: memref<36x128xf32, #tpu.memory_space<vmem>>) attributes {dimension_semantics = [], scalar_prefetch = 0 : i64, scratch_operands = 0 : i64, tpu.core_type = #tpu.core_type<tc>} {
    %c0 = arith.constant 0 : index
    %c0_0 = arith.constant 0 : index
    %0 = vector.load %arg0[%c0, %c0_0] : memref<36x128xf32, #tpu.memory_space<vmem>>, vector<36x128xf32>
    %c0_1 = arith.constant 0 : index
    %c0_2 = arith.constant 0 : index
    %1 = vector.load %arg5[%c0_1, %c0_2] : memref<34x1xf32, #tpu.memory_space<vmem>>, vector<34x1xf32>
    %cst = arith.constant 0.000000e+00 : f32
    %2 = vector.broadcast %cst : f32 to vector<1x128xf32>
    %3 = vector.extract_strided_slice %0 {offsets = [0, 0], sizes = [34, 128], strides = [1, 1]} : vector<36x128xf32> to vector<34x128xf32>
    %c0_3 = arith.constant 0 : index
    %c0_4 = arith.constant 0 : index
    %c0_5 = arith.constant 0 : index
    %4 = vector.load %arg1[%c0_3, %c0_4, %c0_5] : memref<3x128x128xf32, #tpu.memory_space<vmem>>, vector<1x128x128xf32>
    %5 = vector.shape_cast %4 : vector<1x128x128xf32> to vector<128x128xf32>
    %cst_6 = arith.constant dense<0.000000e+00> : vector<34x128xf32>
    %6 = tpu.matmul %3, %5, %cst_6 {dimension_numbers = #tpu.dot_dimension_numbers<[1], [0], [0], [1], [0, 0, 1, 1], [], []>} : vector<34x128xf32>, vector<128x128xf32>, vector<34x128xf32> -> vector<34x128xf32>
    %7 = vector.extract_strided_slice %0 {offsets = [1, 0], sizes = [34, 128], strides = [1, 1]} : vector<36x128xf32> to vector<34x128xf32>
    %c1 = arith.constant 1 : index
    %c0_7 = arith.constant 0 : index
    %c0_8 = arith.constant 0 : index
    %8 = vector.load %arg1[%c1, %c0_7, %c0_8] : memref<3x128x128xf32, #tpu.memory_space<vmem>>, vector<1x128x128xf32>
    %9 = vector.shape_cast %8 : vector<1x128x128xf32> to vector<128x128xf32>
    %cst_9 = arith.constant dense<0.000000e+00> : vector<34x128xf32>
    %10 = tpu.matmul %7, %9, %cst_9 {dimension_numbers = #tpu.dot_dimension_numbers<[1], [0], [0], [1], [0, 0, 1, 1], [], []>} : vector<34x128xf32>, vector<128x128xf32>, vector<34x128xf32> -> vector<34x128xf32>
    %11 = arith.addf %6, %10 : vector<34x128xf32>
    %12 = vector.extract_strided_slice %0 {offsets = [2, 0], sizes = [34, 128], strides = [1, 1]} : vector<36x128xf32> to vector<34x128xf32>
    %c2 = arith.constant 2 : index
    %c0_10 = arith.constant 0 : index
    %c0_11 = arith.constant 0 : index
    %13 = vector.load %arg1[%c2, %c0_10, %c0_11] : memref<3x128x128xf32, #tpu.memory_space<vmem>>, vector<1x128x128xf32>
    %14 = vector.shape_cast %13 : vector<1x128x128xf32> to vector<128x128xf32>
    %cst_12 = arith.constant dense<0.000000e+00> : vector<34x128xf32>
    %15 = tpu.matmul %12, %14, %cst_12 {dimension_numbers = #tpu.dot_dimension_numbers<[1], [0], [0], [1], [0, 0, 1, 1], [], []>} : vector<34x128xf32>, vector<128x128xf32>, vector<34x128xf32> -> vector<34x128xf32>
    %16 = arith.addf %11, %15 : vector<34x128xf32>
    %17 = vector.broadcast %1 : vector<34x1xf32> to vector<34x128xf32>
    %18 = arith.mulf %16, %17 : vector<34x128xf32>
    %cst_13 = arith.constant dense<0.000000e+00> : vector<128xf32>
    %19 = vector.multi_reduction <add>, %18, %cst_13 [0] : vector<34x128xf32> to vector<128xf32>
    %20 = vector.shape_cast %19 : vector<128xf32> to vector<1x128xf32>
    %21 = arith.mulf %18, %18 : vector<34x128xf32>
    %cst_14 = arith.constant dense<0.000000e+00> : vector<128xf32>
    %22 = vector.multi_reduction <add>, %21, %cst_14 [0] : vector<34x128xf32> to vector<128xf32>
    %23 = vector.shape_cast %22 : vector<128xf32> to vector<1x128xf32>
    %24 = tpu.concatenate %20, %23 in 0 : vector<1x128xf32>, vector<1x128xf32> -> vector<2x128xf32>
    %c0_15 = arith.constant 0 : index
    %c0_16 = arith.constant 0 : index
    %25 = vector.load %arg3[%c0_15, %c0_16] : memref<128x8xf32, #tpu.memory_space<vmem>>, vector<128x8xf32>
    %cst_17 = arith.constant dense<0.000000e+00> : vector<2x8xf32>
    %26 = tpu.matmul %24, %25, %cst_17 {dimension_numbers = #tpu.dot_dimension_numbers<[1], [0], [0], [1], [0, 0, 1, 1], [], []>} : vector<2x128xf32>, vector<128x8xf32>, vector<2x8xf32> -> vector<2x8xf32>
    %27 = vector.extract_strided_slice %26 {offsets = [0, 0], sizes = [1, 8], strides = [1, 1]} : vector<2x8xf32> to vector<1x8xf32>
    %cst_18 = arith.constant 0.001953125 : f32
    %28 = vector.broadcast %cst_18 : f32 to vector<1x8xf32>
    %29 = arith.mulf %27, %28 : vector<1x8xf32>
    %30 = vector.extract_strided_slice %26 {offsets = [1, 0], sizes = [1, 8], strides = [1, 1]} : vector<2x8xf32> to vector<1x8xf32>
    %cst_19 = arith.constant 0.001953125 : f32
    %31 = vector.broadcast %cst_19 : f32 to vector<1x8xf32>
    %32 = arith.mulf %30, %31 : vector<1x8xf32>
    %33 = arith.mulf %29, %29 : vector<1x8xf32>
    %34 = arith.subf %32, %33 : vector<1x8xf32>
    %cst_20 = arith.constant 0.000000e+00 : f32
    %35 = vector.broadcast %cst_20 : f32 to vector<1x8xf32>
    %36 = arith.maximumf %34, %35 : vector<1x8xf32>
    %c0_21 = arith.constant 0 : index
    %c0_22 = arith.constant 0 : index
    %37 = vector.load %arg6[%c0_21, %c0_22] : memref<1x8xf32, #tpu.memory_space<vmem>>, vector<1x8xf32>
    %cst_23 = arith.constant 9.99999974E-6 : f32
    %38 = vector.broadcast %cst_23 : f32 to vector<1x8xf32>
    %39 = arith.addf %36, %38 : vector<1x8xf32>
    %40 = math.rsqrt %39 : vector<1x8xf32>
    %41 = arith.mulf %37, %40 : vector<1x8xf32>
    %c0_24 = arith.constant 0 : index
    %c0_25 = arith.constant 0 : index
    %42 = vector.load %arg7[%c0_24, %c0_25] : memref<1x8xf32, #tpu.memory_space<vmem>>, vector<1x8xf32>
    %43 = arith.mulf %29, %41 : vector<1x8xf32>
    %44 = arith.subf %42, %43 : vector<1x8xf32>
    %45 = tpu.concatenate %41, %44 in 0 : vector<1x8xf32>, vector<1x8xf32> -> vector<2x8xf32>
    %c0_26 = arith.constant 0 : index
    %c0_27 = arith.constant 0 : index
    %46 = vector.load %arg4[%c0_26, %c0_27] : memref<8x128xf32, #tpu.memory_space<vmem>>, vector<8x128xf32>
    %cst_28 = arith.constant dense<0.000000e+00> : vector<2x128xf32>
    %47 = tpu.matmul %45, %46, %cst_28 {dimension_numbers = #tpu.dot_dimension_numbers<[1], [0], [0], [1], [0, 0, 1, 1], [], []>} : vector<2x8xf32>, vector<8x128xf32>, vector<2x128xf32> -> vector<2x128xf32>
    %48 = vector.extract_strided_slice %47 {offsets = [0, 0], sizes = [1, 128], strides = [1, 1]} : vector<2x128xf32> to vector<1x128xf32>
    %49 = vector.extract_strided_slice %47 {offsets = [1, 0], sizes = [1, 128], strides = [1, 1]} : vector<2x128xf32> to vector<1x128xf32>
    %50 = vector.broadcast %48 : vector<1x128xf32> to vector<34x128xf32>
    %51 = arith.mulf %18, %50 : vector<34x128xf32>
    %52 = vector.broadcast %49 : vector<1x128xf32> to vector<34x128xf32>
    %53 = arith.addf %51, %52 : vector<34x128xf32>
    %cst_29 = arith.constant 0.000000e+00 : f32
    %54 = vector.broadcast %cst_29 : f32 to vector<34x128xf32>
    %55 = arith.maximumf %53, %54 : vector<34x128xf32>
    %56 = vector.broadcast %1 : vector<34x1xf32> to vector<34x128xf32>
    %57 = arith.mulf %55, %56 : vector<34x128xf32>
    %58 = tpu.concatenate %2, %57, %2 in 0 : vector<1x128xf32>, vector<34x128xf32>, vector<1x128xf32> -> vector<36x128xf32>
    %59 = vector.extract_strided_slice %58 {offsets = [0, 0], sizes = [34, 128], strides = [1, 1]} : vector<36x128xf32> to vector<34x128xf32>
    %c0_30 = arith.constant 0 : index
    %c0_31 = arith.constant 0 : index
    %c0_32 = arith.constant 0 : index
    %60 = vector.load %arg2[%c0_30, %c0_31, %c0_32] : memref<3x128x128xf32, #tpu.memory_space<vmem>>, vector<1x128x128xf32>
    %61 = vector.shape_cast %60 : vector<1x128x128xf32> to vector<128x128xf32>
    %cst_33 = arith.constant dense<0.000000e+00> : vector<34x128xf32>
    %62 = tpu.matmul %59, %61, %cst_33 {dimension_numbers = #tpu.dot_dimension_numbers<[1], [0], [0], [1], [0, 0, 1, 1], [], []>} : vector<34x128xf32>, vector<128x128xf32>, vector<34x128xf32> -> vector<34x128xf32>
    %63 = vector.extract_strided_slice %58 {offsets = [1, 0], sizes = [34, 128], strides = [1, 1]} : vector<36x128xf32> to vector<34x128xf32>
    %c1_34 = arith.constant 1 : index
    %c0_35 = arith.constant 0 : index
    %c0_36 = arith.constant 0 : index
    %64 = vector.load %arg2[%c1_34, %c0_35, %c0_36] : memref<3x128x128xf32, #tpu.memory_space<vmem>>, vector<1x128x128xf32>
    %65 = vector.shape_cast %64 : vector<1x128x128xf32> to vector<128x128xf32>
    %cst_37 = arith.constant dense<0.000000e+00> : vector<34x128xf32>
    %66 = tpu.matmul %63, %65, %cst_37 {dimension_numbers = #tpu.dot_dimension_numbers<[1], [0], [0], [1], [0, 0, 1, 1], [], []>} : vector<34x128xf32>, vector<128x128xf32>, vector<34x128xf32> -> vector<34x128xf32>
    %67 = arith.addf %62, %66 : vector<34x128xf32>
    %68 = vector.extract_strided_slice %58 {offsets = [2, 0], sizes = [34, 128], strides = [1, 1]} : vector<36x128xf32> to vector<34x128xf32>
    %c2_38 = arith.constant 2 : index
    %c0_39 = arith.constant 0 : index
    %c0_40 = arith.constant 0 : index
    %69 = vector.load %arg2[%c2_38, %c0_39, %c0_40] : memref<3x128x128xf32, #tpu.memory_space<vmem>>, vector<1x128x128xf32>
    %70 = vector.shape_cast %69 : vector<1x128x128xf32> to vector<128x128xf32>
    %cst_41 = arith.constant dense<0.000000e+00> : vector<34x128xf32>
    %71 = tpu.matmul %68, %70, %cst_41 {dimension_numbers = #tpu.dot_dimension_numbers<[1], [0], [0], [1], [0, 0, 1, 1], [], []>} : vector<34x128xf32>, vector<128x128xf32>, vector<34x128xf32> -> vector<34x128xf32>
    %72 = arith.addf %67, %71 : vector<34x128xf32>
    %73 = vector.broadcast %1 : vector<34x1xf32> to vector<34x128xf32>
    %74 = arith.mulf %72, %73 : vector<34x128xf32>
    %cst_42 = arith.constant dense<0.000000e+00> : vector<128xf32>
    %75 = vector.multi_reduction <add>, %74, %cst_42 [0] : vector<34x128xf32> to vector<128xf32>
    %76 = vector.shape_cast %75 : vector<128xf32> to vector<1x128xf32>
    %77 = arith.mulf %74, %74 : vector<34x128xf32>
    %cst_43 = arith.constant dense<0.000000e+00> : vector<128xf32>
    %78 = vector.multi_reduction <add>, %77, %cst_43 [0] : vector<34x128xf32> to vector<128xf32>
    %79 = vector.shape_cast %78 : vector<128xf32> to vector<1x128xf32>
    %80 = tpu.concatenate %76, %79 in 0 : vector<1x128xf32>, vector<1x128xf32> -> vector<2x128xf32>
    %c0_44 = arith.constant 0 : index
    %c0_45 = arith.constant 0 : index
    %81 = vector.load %arg3[%c0_44, %c0_45] : memref<128x8xf32, #tpu.memory_space<vmem>>, vector<128x8xf32>
    %cst_46 = arith.constant dense<0.000000e+00> : vector<2x8xf32>
    %82 = tpu.matmul %80, %81, %cst_46 {dimension_numbers = #tpu.dot_dimension_numbers<[1], [0], [0], [1], [0, 0, 1, 1], [], []>} : vector<2x128xf32>, vector<128x8xf32>, vector<2x8xf32> -> vector<2x8xf32>
    %83 = vector.extract_strided_slice %82 {offsets = [0, 0], sizes = [1, 8], strides = [1, 1]} : vector<2x8xf32> to vector<1x8xf32>
    %cst_47 = arith.constant 0.001953125 : f32
    %84 = vector.broadcast %cst_47 : f32 to vector<1x8xf32>
    %85 = arith.mulf %83, %84 : vector<1x8xf32>
    %86 = vector.extract_strided_slice %82 {offsets = [1, 0], sizes = [1, 8], strides = [1, 1]} : vector<2x8xf32> to vector<1x8xf32>
    %cst_48 = arith.constant 0.001953125 : f32
    %87 = vector.broadcast %cst_48 : f32 to vector<1x8xf32>
    %88 = arith.mulf %86, %87 : vector<1x8xf32>
    %89 = arith.mulf %85, %85 : vector<1x8xf32>
    %90 = arith.subf %88, %89 : vector<1x8xf32>
    %cst_49 = arith.constant 0.000000e+00 : f32
    %91 = vector.broadcast %cst_49 : f32 to vector<1x8xf32>
    %92 = arith.maximumf %90, %91 : vector<1x8xf32>
    %c0_50 = arith.constant 0 : index
    %c0_51 = arith.constant 0 : index
    %93 = vector.load %arg8[%c0_50, %c0_51] : memref<1x8xf32, #tpu.memory_space<vmem>>, vector<1x8xf32>
    %cst_52 = arith.constant 9.99999974E-6 : f32
    %94 = vector.broadcast %cst_52 : f32 to vector<1x8xf32>
    %95 = arith.addf %92, %94 : vector<1x8xf32>
    %96 = math.rsqrt %95 : vector<1x8xf32>
    %97 = arith.mulf %93, %96 : vector<1x8xf32>
    %c0_53 = arith.constant 0 : index
    %c0_54 = arith.constant 0 : index
    %98 = vector.load %arg9[%c0_53, %c0_54] : memref<1x8xf32, #tpu.memory_space<vmem>>, vector<1x8xf32>
    %99 = arith.mulf %85, %97 : vector<1x8xf32>
    %100 = arith.subf %98, %99 : vector<1x8xf32>
    %101 = tpu.concatenate %97, %100 in 0 : vector<1x8xf32>, vector<1x8xf32> -> vector<2x8xf32>
    %c0_55 = arith.constant 0 : index
    %c0_56 = arith.constant 0 : index
    %102 = vector.load %arg4[%c0_55, %c0_56] : memref<8x128xf32, #tpu.memory_space<vmem>>, vector<8x128xf32>
    %cst_57 = arith.constant dense<0.000000e+00> : vector<2x128xf32>
    %103 = tpu.matmul %101, %102, %cst_57 {dimension_numbers = #tpu.dot_dimension_numbers<[1], [0], [0], [1], [0, 0, 1, 1], [], []>} : vector<2x8xf32>, vector<8x128xf32>, vector<2x128xf32> -> vector<2x128xf32>
    %104 = vector.extract_strided_slice %103 {offsets = [0, 0], sizes = [1, 128], strides = [1, 1]} : vector<2x128xf32> to vector<1x128xf32>
    %105 = vector.extract_strided_slice %103 {offsets = [1, 0], sizes = [1, 128], strides = [1, 1]} : vector<2x128xf32> to vector<1x128xf32>
    %106 = vector.extract_strided_slice %0 {offsets = [1, 0], sizes = [34, 128], strides = [1, 1]} : vector<36x128xf32> to vector<34x128xf32>
    %107 = vector.broadcast %104 : vector<1x128xf32> to vector<34x128xf32>
    %108 = arith.mulf %74, %107 : vector<34x128xf32>
    %109 = vector.broadcast %105 : vector<1x128xf32> to vector<34x128xf32>
    %110 = arith.addf %108, %109 : vector<34x128xf32>
    %111 = arith.addf %106, %110 : vector<34x128xf32>
    %cst_58 = arith.constant 0.000000e+00 : f32
    %112 = vector.broadcast %cst_58 : f32 to vector<34x128xf32>
    %113 = arith.maximumf %111, %112 : vector<34x128xf32>
    %114 = tpu.concatenate %2, %113, %2 in 0 : vector<1x128xf32>, vector<34x128xf32>, vector<1x128xf32> -> vector<36x128xf32>
    %c0_59 = arith.constant 0 : index
    %c0_60 = arith.constant 0 : index
    %115 = vector.load %arg10[%c0_59, %c0_60] : memref<36x128xf32, #tpu.memory_space<vmem>>, vector<36x128xf32>
    tpu.vector_store %arg10[%c0_59, %c0_60], %114 {strides = array<i32>} : memref<36x128xf32, #tpu.memory_space<vmem>>, vector<36x128xf32>,
    return
  }
}

</mosaic_0001>

<bundles_post_ra>
// kernel: tile.9
= control target key start
LH: loop header
LB: loop body
LE: loop exit
PB: predicated region body
PF: predicated region fallthrough
CT: control target
= control target key end

     0   :  { %vm6_vm0 = vcmask 1043458   ;;  %vm10_vm1 = vcmask 1045508   ;;  %vm14_vm2 = vcmask 1047558   ;;  %s19_s6 = smov 3  ;;  %s22_s7 = smov 12  ;;  %vm16_vm3 = vcmask 64512   ;;  %s736_s0 = inlined_call_operand.vmem [shape: f32[16,8,8], index: 0, kind: input, shape index: {}]   ;;  %s737_s1 = inlined_call_operand.vmem [shape: f32[128,8], index: 1, kind: output, shape index: {}]  }
   0x1   :  { %v348_v0 = vld [vmem:[%s736_s0 + $0xf] ss:$16 sm:%s19_s6]   ;;  %s27_s12 = smov 48  ;;  %s32_s13 = smov 192  ;;  %vm38_vm4 = vcmask 1048512   ;;  %vm60_vm5 = vcmask 982912  }
   0x2   :  { %v349_v1 = vld [vmem:[%s736_s0 + $0xf] ss:$16 sm:%s22_s7]   ;;  %s63_s18 = smov 3  ;;  %s66_s21 = smov 12  ;;  %vm82_vm6 = vcmask 917312   ;;  %vm104_vm7 = vcmask 851712  }
   0x3   :  { %v25_v2 = vsel %vm6_vm0, %v349_v1, %v348_v0  ;;  %v350_v3 = vld [vmem:[%s736_s0 + $0xf] ss:$16 sm:%s27_s12]   ;;  %v356_v6 = vld [vmem:[%s736_s0 + $0xd] ss:$16 sm:%s63_s18]   ;;  %s71_s22 = smov 48  ;;  %s76_s27 = smov 192 }
   0x4   :  { %v351_v4 = vld [vmem:[%s736_s0 + $0xf] ss:$16 sm:%s32_s13]   ;;  %v30_v5 = vsel %vm10_vm1, %v350_v3, %v25_v2  ;;  %v357_v8 = vld [vmem:[%s736_s0 + $0xd] ss:$16 sm:%s66_s21]   ;;  %s423_s28 = smov 120   ;;  %s41_s2 = smov 3 }
   0x5   :  { %v35_v7 = vsel %vm14_vm2, %v351_v4, %v30_v5  ;;  %v358_v9 = vld [vmem:[%s736_s0 + $0xd] ss:$16 sm:%s71_s22]   ;;  %v69_v10 = vsel %vm6_vm0, %v357_v8, %v356_v6  ;;  %s44_s3 = smov 12  ;;  %v352_v13 = vld [vmem:[%s736_s0 + $0xe] ss:$16 sm:%s41_s2]   ;;  %s49_s8 = smov 48 }
   0x6   :  { %36 = vrot.lane.b32.xlu0 %v35_v7, %s423_s28  ;;  %v359_v11 = vld [vmem:[%s736_s0 + $0xd] ss:$16 sm:%s76_s27]   ;;  %v74_v12 = vsel %vm10_vm1, %v358_v9, %v69_v10  ;;  %s54_s9 = smov 192  ;;  %s85_s14 = smov 3  ;;  %vm126_vm8 = vcmask 786112   ;;  %vm148_vm9 = vcmask 720512  }
   0x7   :  { %v353_v14 = vld [vmem:[%s736_s0 + $0xe] ss:$16 sm:%s44_s3]   ;;  %v79_v15 = vsel %vm14_vm2, %v359_v11, %v74_v12  ;;  %s424_s15 = smov 104   ;;  %v360_v20 = vld [vmem:[%s736_s0 + $0xc] ss:$16 sm:%s85_s14]   ;;  %s88_s18 = smov 12 }
   0x8   :  { %v47_v16 = vsel %vm6_vm0, %v353_v14, %v352_v13  ;;  %v354_v17 = vld [vmem:[%s736_s0 + $0xe] ss:$16 sm:%s49_s8]   ;;  %80 = vrot.lane.b32.xlu1 %v79_v15, %s424_s15  ;;  %s93_s19 = smov 48  ;;  %s98_s24 = smov 192  ;;  %vm170_vm10 = vcmask 654912   ;;  %vm192_vm11 = vcmask 589312  }
   0x9   :  { %v355_v18 = vld [vmem:[%s736_s0 + $0xe] ss:$16 sm:%s54_s9]   ;;  %v52_v19 = vsel %vm10_vm1, %v354_v17, %v47_v16  ;;  %v361_v22 = vld [vmem:[%s736_s0 + $0xc] ss:$16 sm:%s88_s18]   ;;  %s425_s25 = smov 112   ;;  %s107_s28 = smov 3 }
   0xa   :  { %v57_v21 = vsel %vm14_vm2, %v355_v18, %v52_v19  ;;  %v362_v23 = vld [vmem:[%s736_s0 + $0xc] ss:$16 sm:%s93_s19]   ;;  %v91_v24 = vsel %vm6_vm0, %v361_v22, %v360_v20  ;;  %s110_s29 = smov 12  ;;  %v364_v27 = vld [vmem:[%s736_s0 + $0xb] ss:$16 sm:%s107_s28]   ;;  %s115_s5 = smov 48 }
   0xb   :  { %58 = vrot.lane.b32.xlu0 %v57_v21, %s425_s25  ;;  %v363_v25 = vld [vmem:[%s736_s0 + $0xc] ss:$16 sm:%s98_s24]   ;;  %v96_v26 = vsel %vm10_vm1, %v362_v23, %v91_v24  ;;  %s120_s6 = smov 192  ;;  %s129_s11 = smov 3  ;;  %vm214_vm12 = vcmask 523712   ;;  %vm236_vm13 = vcmask 458112  }
   0xc   :  { %v365_v28 = vld [vmem:[%s736_s0 + $0xb] ss:$16 sm:%s110_s29]   ;;  %v101_v29 = vsel %vm14_vm2, %v363_v25, %v96_v26  ;;  %s426_s12 = smov 96   ;;  %v368_v34 = vld [vmem:[%s736_s0 + $0xa] ss:$16 sm:%s129_s11]   ;;  %s132_s15 = smov 12 }
   0xd   :  { %v113_v30 = vsel %vm6_vm0, %v365_v28, %v364_v27  ;;  %v366_v31 = vld [vmem:[%s736_s0 + $0xb] ss:$16 sm:%s115_s5]   ;;  %102 = vrot.lane.b32.xlu1 %v101_v29, %s426_s12  ;;  %s137_s16 = smov 48  ;;  %s142_s21 = smov 192  ;;  %vm258_vm14 = vcmask 392512   ;;  %vm280_vm15 = vcmask 326912  }
   0xe   :  { %v367_v32 = vld [vmem:[%s736_s0 + $0xb] ss:$16 sm:%s120_s6]   ;;  %v118_v33 = vsel %vm10_vm1, %v366_v31, %v113_v30  ;;  %v369_v36 = vld [vmem:[%s736_s0 + $0xa] ss:$16 sm:%s132_s15]   ;;  %s427_s22 = smov 88   ;;  %s151_s25 = smov 3 }
   0xf   :  { %v123_v35 = vsel %vm14_vm2, %v367_v32, %v118_v33  ;;  %v370_v37 = vld [vmem:[%s736_s0 + $0xa] ss:$16 sm:%s137_s16]   ;;  %v135_v38 = vsel %vm6_vm0, %v369_v36, %v368_v34  ;;  %s154_s26 = smov 12  ;;  %v372_v41 = vld [vmem:[%s736_s0 + $0x9] ss:$16 sm:%s151_s25]   ;;  %s159_s2 = smov 48 }
  0x10   :  { %124 = vrot.lane.b32.xlu0 %v123_v35, %s427_s22  ;;  %v371_v39 = vld [vmem:[%s736_s0 + $0xa] ss:$16 sm:%s142_s21]   ;;  %v140_v40 = vsel %vm10_vm1, %v370_v37, %v135_v38  ;;  %s164_s3 = smov 192  ;;  %s173_s8 = smov 3 }
  0x11   :  { %v373_v42 = vld [vmem:[%s736_s0 + $0x9] ss:$16 sm:%s154_s26]   ;;  %v145_v43 = vsel %vm14_vm2, %v371_v39, %v140_v40  ;;  %s428_s9 = smov 80   ;;  %v376_v48 = vld [vmem:[%s736_s0 + $0x8] ss:$16 sm:%s173_s8]   ;;  %s176_s12 = smov 12 }
  0x12   :  { %v157_v44 = vsel %vm6_vm0, %v373_v42, %v372_v41  ;;  %v374_v45 = vld [vmem:[%s736_s0 + $0x9] ss:$16 sm:%s159_s2]   ;;  %146 = vrot.lane.b32.xlu1 %v145_v43, %s428_s9  ;;  %s181_s13 = smov 48  ;;  %s186_s18 = smov 192 }
  0x13   :  { %v375_v46 = vld [vmem:[%s736_s0 + $0x9] ss:$16 sm:%s164_s3]   ;;  %v162_v47 = vsel %vm10_vm1, %v374_v45, %v157_v44  ;;  %v377_v50 = vld [vmem:[%s736_s0 + $0x8] ss:$16 sm:%s176_s12]   ;;  %s429_s19 = smov 72   ;;  %s195_s22 = smov 3 }
  0x14   :  { %v167_v49 = vsel %vm14_vm2, %v375_v46, %v162_v47  ;;  %v378_v51 = vld [vmem:[%s736_s0 + $0x8] ss:$16 sm:%s181_s13]   ;;  %v179_v52 = vsel %vm6_vm0, %v377_v50, %v376_v48  ;;  %s198_s23 = smov 12  ;;  %v380_v55 = vld [vmem:[%s736_s0 + $0x7] ss:$16 sm:%s195_s22]   ;;  %s203_s28 = smov 48 }
  0x15   :  { %168 = vrot.lane.b32.xlu0 %v167_v49, %s429_s19  ;;  %v379_v53 = vld [vmem:[%s736_s0 + $0x8] ss:$16 sm:%s186_s18]   ;;  %v184_v54 = vsel %vm10_vm1, %v378_v51, %v179_v52  ;;  %s208_s29 = smov 192  ;;  %s217_s5 = smov 3 }
  0x16   :  { %v381_v56 = vld [vmem:[%s736_s0 + $0x7] ss:$16 sm:%s198_s23]   ;;  %v189_v57 = vsel %vm14_vm2, %v379_v53, %v184_v54  ;;  %s430_s6 = smov 64   ;;  %v384_v62 = vld [vmem:[%s736_s0 + $0x6] ss:$16 sm:%s217_s5]   ;;  %s220_s9 = smov 12 }
  0x17   :  { %v201_v58 = vsel %vm6_vm0, %v381_v56, %v380_v55  ;;  %v382_v59 = vld [vmem:[%s736_s0 + $0x7] ss:$16 sm:%s203_s28]   ;;  %190 = vrot.lane.b32.xlu1 %v189_v57, %s430_s6  ;;  %s225_s10 = smov 48  ;;  %s230_s15 = smov 192 }
  0x18   :  { %v383_v60 = vld [vmem:[%s736_s0 + $0x7] ss:$16 sm:%s208_s29]   ;;  %v206_v61 = vsel %vm10_vm1, %v382_v59, %v201_v58  ;;  %v385_v0 = vld [vmem:[%s736_s0 + $0x6] ss:$16 sm:%s220_s9]   ;;  %s431_s16 = smov 56   ;;  %s239_s19 = smov 3 }
  0x19   :  { %v211_v63 = vsel %vm14_vm2, %v383_v60, %v206_v61  ;;  %v386_v1 = vld [vmem:[%s736_s0 + $0x6] ss:$16 sm:%s225_s10]   ;;  %v223_v2 = vsel %vm6_vm0, %v385_v0, %v384_v62  ;;  %s242_s20 = smov 12  ;;  %v388_v5 = vld [vmem:[%s736_s0 + $0x5] ss:$16 sm:%s239_s19]   ;;  %s247_s25 = smov 48 }
  0x1a   :  { %212 = vrot.lane.b32.xlu0 %v211_v63, %s431_s16  ;;  %v387_v3 = vld [vmem:[%s736_s0 + $0x6] ss:$16 sm:%s230_s15]   ;;  %v228_v4 = vsel %vm10_vm1, %v386_v1, %v223_v2  ;;  %s252_s26 = smov 192  ;;  %s261_s2 = smov 3 }
  0x1b   :  { %v389_v6 = vld [vmem:[%s736_s0 + $0x5] ss:$16 sm:%s242_s20]   ;;  %v233_v7 = vsel %vm14_vm2, %v387_v3, %v228_v4  ;;  %s432_s3 = smov 48   ;;  %v392_v12 = vld [vmem:[%s736_s0 + $0x4] ss:$16 sm:%s261_s2]   ;;  %s264_s6 = smov 12 }
  0x1c   :  { %v245_v8 = vsel %vm6_vm0, %v389_v6, %v388_v5  ;;  %v390_v9 = vld [vmem:[%s736_s0 + $0x5] ss:$16 sm:%s247_s25]   ;;  %234 = vrot.lane.b32.xlu1 %v233_v7, %s432_s3  ;;  %s269_s7 = smov 48  ;;  %s274_s12 = smov 192 }
  0x1d   :  { %v391_v10 = vld [vmem:[%s736_s0 + $0x5] ss:$16 sm:%s252_s26]   ;;  %v250_v11 = vsel %vm10_vm1, %v390_v9, %v245_v8  ;;  %v393_v14 = vld [vmem:[%s736_s0 + $0x4] ss:$16 sm:%s264_s6]   ;;  %s433_s13 = smov 40   ;;  %s283_s16 = smov 3 }
  0x1e   :  { %v255_v13 = vsel %vm14_vm2, %v391_v10, %v250_v11  ;;  %v394_v15 = vld [vmem:[%s736_s0 + $0x4] ss:$16 sm:%s269_s7]   ;;  %v267_v16 = vsel %vm6_vm0, %v393_v14, %v392_v12  ;;  %s286_s17 = smov 12  ;;  %v396_v19 = vld [vmem:[%s736_s0 + $0x3] ss:$16 sm:%s283_s16]   ;;  %s291_s22 = smov 48 }
  0x1f   :  { %256 = vrot.lane.b32.xlu0 %v255_v13, %s433_s13  ;;  %v395_v17 = vld [vmem:[%s736_s0 + $0x4] ss:$16 sm:%s274_s12]   ;;  %v272_v18 = vsel %vm10_vm1, %v394_v15, %v267_v16  ;;  %s296_s23 = smov 192  ;;  %s305_s28 = smov 3 }
  0x20   :  { %v397_v20 = vld [vmem:[%s736_s0 + $0x3] ss:$16 sm:%s286_s17]   ;;  %v277_v21 = vsel %vm14_vm2, %v395_v17, %v272_v18  ;;  %s434_s29 = smov 32   ;;  %v400_v26 = vld [vmem:[%s736_s0 + $0x2] ss:$16 sm:%s305_s28]   ;;  %s308_s3 = smov 12 }
  0x21   :  { %v289_v22 = vsel %vm6_vm0, %v397_v20, %v396_v19  ;;  %v398_v23 = vld [vmem:[%s736_s0 + $0x3] ss:$16 sm:%s291_s22]   ;;  %278 = vrot.lane.b32.xlu1 %v277_v21, %s434_s29  ;;  %s313_s4 = smov 48  ;;  %s318_s9 = smov 192 }
  0x22   :  { %v399_v24 = vld [vmem:[%s736_s0 + $0x3] ss:$16 sm:%s296_s23]   ;;  %v294_v25 = vsel %vm10_vm1, %v398_v23, %v289_v22  ;;  %v401_v28 = vld [vmem:[%s736_s0 + $0x2] ss:$16 sm:%s308_s3]   ;;  %s435_s10 = smov 24   ;;  %s327_s13 = smov 3 }
  0x23   :  { %v299_v27 = vsel %vm14_vm2, %v399_v24, %v294_v25  ;;  %v402_v29 = vld [vmem:[%s736_s0 + $0x2] ss:$16 sm:%s313_s4]   ;;  %v311_v30 = vsel %vm6_vm0, %v401_v28, %v400_v26  ;;  %s330_s14 = smov 12  ;;  %v404_v33 = vld [vmem:[%s736_s0 + $0x1] ss:$16 sm:%s327_s13]   ;;  %s335_s19 = smov 48 }
  0x24   :  { %300 = vrot.lane.b32.xlu0 %v299_v27, %s435_s10  ;;  %v403_v31 = vld [vmem:[%s736_s0 + $0x2] ss:$16 sm:%s318_s9]   ;;  %v316_v32 = vsel %vm10_vm1, %v402_v29, %v311_v30  ;;  %s340_s20 = smov 192  ;;  %s2_s25 = smov 3 }
  0x25   :  { %v405_v34 = vld [vmem:[%s736_s0 + $0x1] ss:$16 sm:%s330_s14]   ;;  %v321_v35 = vsel %vm14_vm2, %v403_v31, %v316_v32  ;;  %s436_s26 = smov 16   ;;  %s4_s27 = smov 12  ;;  %v3_v40 = vld [vmem:[%s736_s0] ss:$16 sm:%s2_s25]  }
  0x26   :  { %v333_v36 = vsel %vm6_vm0, %v405_v34, %v404_v33  ;;  %v406_v37 = vld [vmem:[%s736_s0 + $0x1] ss:$16 sm:%s335_s19]   ;;  %322 = vrot.lane.b32.xlu1 %v321_v35, %s436_s26  ;;  %s8_s28 = smov 48  ;;  %s12_s2 = smov 192 }
  0x27   :  { %v407_v38 = vld [vmem:[%s736_s0 + $0x1] ss:$16 sm:%s340_s20]   ;;  %v338_v39 = vsel %vm10_vm1, %v406_v37, %v333_v36  ;;  %v5_v42 = vld [vmem:[%s736_s0] ss:$16 sm:%s4_s27]   ;;  %s437_s7 = smov 8  }
  0x28   :  { %v343_v41 = vsel %vm14_vm2, %v407_v38, %v338_v39  ;;  %v9_v43 = vld [vmem:[%s736_s0] ss:$16 sm:%s8_s28]   ;;  %v7_v44 = vsel %vm6_vm0, %v5_v42, %v3_v40  ;;  %vm302_vm0 = vcmask 261312  }
  0x29   :  { %344 = vrot.lane.b32.xlu0 %v343_v41, %s437_s7  ;;  %v13_v45 = vld [vmem:[%s736_s0] ss:$16 sm:%s12_s2]   ;;  %v11_v46 = vsel %vm10_vm1, %v9_v43, %v7_v44  ;;  %vm324_vm1 = vcmask 195712  }
  0x2a   :  { %v15_v47 = vsel %vm14_vm2, %v13_v45, %v11_v46  ;;  %vm346_vm2 = vcmask 130112  }
  0x2b   :  { %17 = vst.msk [vmem:[%s737_s1] sm:$0xff] %vm16_vm3, %v15_v47  }
  0x78   :  { %v37_v48 = vpop.permute.xlu0 %36  }
  0x79   :  { %39 = vst.msk [vmem:[%s737_s1] sm:$0xff] %vm38_vm4, %v37_v48  }
  0x7a   :  { %v81_v49 = vpop.permute.xlu1 %80  }
  0x7d   :  { %v59_v50 = vpop.permute.xlu0 %58  }
  0x7e   :  { %61 = vst.msk [vmem:[%s737_s1] sm:$0xff] %vm60_vm5, %v59_v50  }
  0x7f   :  { %83 = vst.msk [vmem:[%s737_s1] sm:$0xff] %vm82_vm6, %v81_v49   ;;  %v103_v51 = vpop.permute.xlu1 %102  }
  0x80   :  { %105 = vst.msk [vmem:[%s737_s1] sm:$0xff] %vm104_vm7, %v103_v51  }
  0x82   :  { %v125_v52 = vpop.permute.xlu0 %124  }
  0x83   :  { %127 = vst.msk [vmem:[%s737_s1] sm:$0xff] %vm126_vm8, %v125_v52  }
  0x84   :  { %v147_v53 = vpop.permute.xlu1 %146  }
  0x85   :  { %149 = vst.msk [vmem:[%s737_s1] sm:$0xff] %vm148_vm9, %v147_v53  }
  0x87   :  { %v169_v54 = vpop.permute.xlu0 %168  }
  0x88   :  { %171 = vst.msk [vmem:[%s737_s1] sm:$0xff] %vm170_vm10, %v169_v54  }
  0x89   :  { %v191_v55 = vpop.permute.xlu1 %190  }
  0x8a   :  { %193 = vst.msk [vmem:[%s737_s1] sm:$0xff] %vm192_vm11, %v191_v55  }
  0x8c   :  { %v213_v56 = vpop.permute.xlu0 %212  }
  0x8d   :  { %215 = vst.msk [vmem:[%s737_s1] sm:$0xff] %vm214_vm12, %v213_v56  }
  0x8e   :  { %v235_v57 = vpop.permute.xlu1 %234  }
  0x8f   :  { %237 = vst.msk [vmem:[%s737_s1] sm:$0xff] %vm236_vm13, %v235_v57  }
  0x91   :  { %v257_v58 = vpop.permute.xlu0 %256  }
  0x92   :  { %259 = vst.msk [vmem:[%s737_s1] sm:$0xff] %vm258_vm14, %v257_v58  }
  0x93   :  { %v279_v59 = vpop.permute.xlu1 %278  }
  0x94   :  { %281 = vst.msk [vmem:[%s737_s1] sm:$0xff] %vm280_vm15, %v279_v59  }
  0x96   :  { %v301_v60 = vpop.permute.xlu0 %300  }
  0x97   :  { %303 = vst.msk [vmem:[%s737_s1] sm:$0xff] %vm302_vm0, %v301_v60  }
  0x98   :  { %v323_v61 = vpop.permute.xlu1 %322  }
  0x99   :  { %325 = vst.msk [vmem:[%s737_s1] sm:$0xff] %vm324_vm1, %v323_v61  }
  0x9b   :  { %v345_v62 = vpop.permute.xlu0 %344  }
  0x9c   :  { %347 = vst.msk [vmem:[%s737_s1] sm:$0xff] %vm346_vm2, %v345_v62  }

// kernel: residual_block.1
= control target key start
LH: loop header
LB: loop body
LE: loop exit
PB: predicated region body
PF: predicated region fallthrough
CT: control target
= control target key end

     0   :  { %v2184_v0 = vmov 0.0|0.0   ;;  %vm2185_vm0 = vmmov 0   ;;  %v2186_v4 = vmov 0.0   ;;  %v2187_v7 = vmov 0   ;;  %s3002_s1 = inlined_call_operand.vmem [shape: f32[3,128,128], index: 1, kind: input, shape index: {}]   ;;  %s3003_s5 = inlined_call_operand.vmem [shape: f32[34,1], index: 5, kind: input, shape index: {}]   ;;  %s3004_s0 = inlined_call_operand.vmem [shape: f32[36,128], index: 0, kind: input, shape index: {}]   ;;  %s3005_s3 = inlined_call_operand.vmem [shape: f32[128,8], index: 3, kind: input, shape index: {}]   ;;  %s3006_s4 = inlined_call_operand.vmem [shape: f32[8,128], index: 4, kind: input, shape index: {}]   ;;  %s3007_s6 = inlined_call_operand.vmem [shape: f32[1,8], index: 6, kind: input, shape index: {}]   ;;  %s3008_s7 = inlined_call_operand.vmem [shape: f32[1,8], index: 7, kind: input, shape index: {}]   ;;  %s3009_s2 = inlined_call_operand.vmem [shape: f32[3,128,128], index: 2, kind: input, shape index: {}]   ;;  %s3010_s8 = inlined_call_operand.vmem [shape: f32[1,8], index: 8, kind: input, shape index: {}]   ;;  %s3011_s9 = inlined_call_operand.vmem [shape: f32[1,8], index: 9, kind: input, shape index: {}]   ;;  %s3012_s10 = inlined_call_operand.vmem [shape: f32[36,128], index: 10, kind: output, shape index: {}]  }
   0x1   :  { %1936 = vmatprep.subr.bf16.mxu0 %v2184_v0  ;;  %v1341_v1 = vld [vmem:[%s3002_s1 + $0x80] sm:$0xff]  ;;  %v1342_v2 = vld [vmem:[%s3002_s1 + $0x88] sm:$0xff]  ;;  %v1343_v3 = vld [vmem:[%s3002_s1 + $0x90] sm:$0xff]  ;;  %1606 = vmatprep.mubr.msk.f32.mxu0 %vm2185_vm0, %v2186_v4  ;;  %vm83_vm1 = vcmask 1046528   ;;  %vm295_vm2 = vcmask 1045504   ;;  %vm438_vm3 = vcmask 1041408  }
   0x2   :  { %v1937_v5 = vpack.c.bf16 %v1342_v2, %v1341_v1  ;;  %v1344_v6 = vld [vmem:[%s3002_s1 + $0x98] sm:$0xff]  ;;  %2173 = vset.pattern.permute.xlu0 %v2187_v7  ;;  %2174 = vset.pattern.permute.xlu1 %v2187_v7  ;;  %v1345_v9 = vld [vmem:[%s3002_s1 + $0xa0] sm:$0xff]  ;;  %v1346_v10 = vld [vmem:[%s3002_s1 + $0xa8] sm:$0xff]  ;;  %vm463_vm4 = vcmask 1040384   ;;  %vm590_vm5 = vcmask 64512   ;;  %vm712_vm6 = vcmask 1042432  }
   0x3   :  { %2008 = vmatprep.subr.bf16.mxu1 %v2184_v0  ;;  %1747 = vmatprep.mubr.msk.f32.mxu1 %vm2185_vm0, %v2186_v4  ;;  %v1940_v8 = vpack.c.bf16 %v1344_v6, %v1343_v3  ;;  %v1943_v11 = vpack.c.bf16 %v1346_v10, %v1345_v9  ;;  %v1347_v12 = vld [vmem:[%s3002_s1 + $0xb0] sm:$0xff]  ;;  %v1348_v13 = vld [vmem:[%s3002_s1 + $0xb8] sm:$0xff]  ;;  %v1349_v15 = vld [vmem:[%s3002_s1 + $0xc0] sm:$0xff] }
   0x4   :  { %1938 = vmatpush3.bf16.msra.mxu0 %v1937_v5  ;;  %v1946_v14 = vpack.c.bf16 %v1348_v13, %v1347_v12  ;;  %v1350_v16 = vld [vmem:[%s3002_s1 + $0xc8] sm:$0xff]  ;;  %v1351_v18 = vld [vmem:[%s3002_s1 + $0xd0] sm:$0xff]  ;;  %v1352_v19 = vld [vmem:[%s3002_s1 + $0xd8] sm:$0xff] }
   0x5   :  { %1939 = vmatprep.subr.bf16.mxu0 %v2184_v0  ;;  %v1949_v17 = vpack.c.bf16 %v1350_v16, %v1349_v15  ;;  %v40_v20 = vld [vmem:[%s3003_s5] sm:$0xff]  ;;  %v42_v21 = vld [vmem:[%s3003_s5 + $0x10] sm:$0xff]  ;;  %v1952_v22 = vpack.c.bf16 %v1352_v19, %v1351_v18  ;;  %v41_v23 = vld [vmem:[%s3003_s5 + $0x8] sm:$0xff] }
   0x6   :  { %407 = vperm.xlu0 %2173, %v40_v20   ;;  %417 = vperm.xlu1 %2174, %v42_v21   ;;  %v1353_v24 = vld [vmem:[%s3002_s1 + $0xe0] sm:$0xff]  ;;  %v1354_v25 = vld [vmem:[%s3002_s1 + $0xe8] sm:$0xff]  ;;  %v43_v26 = vld [vmem:[%s3003_s5 + $0x18] sm:$0xff] }
   0x7   :  { %v1955_v27 = vpack.c.bf16 %v1354_v25, %v1353_v24  ;;  %v1355_v28 = vld [vmem:[%s3002_s1 + $0xf0] sm:$0xff]  ;;  %v44_v29 = vld [vmem:[%s3003_s5 + $0x20] sm:$0x3]  ;;  %v1356_v30 = vld [vmem:[%s3002_s1 + $0xf8] sm:$0xff] }
   0x8   :  { %1941 = vmatpush3.bf16.msra.mxu0 %v1940_v8  ;;  %v2322_v31 = vld [vmem:[%s3004_s0] sm:$0xff]  ;;  %v2327_v32 = vld [vmem:[%s3004_s0 + $0x8] sm:$0xff]  ;;  %v1958_v33 = vpack.c.bf16 %v1356_v30, %v1355_v28  ;;  %v2341_v38 = vld [vmem:[%s3004_s0 + $0x10] sm:$0xff] }
   0x9   :  { %1942 = vmatprep.subr.bf16.mxu0 %v2184_v0  ;;  %v84_v34 = vrot.slane %v2322_v31, 1  ;;  %v85_v35 = vrot.slane %v2327_v32, 1  ;;  %v45_v36 = vld [vmem:[%s3002_s1] sm:$0xff]  ;;  %v46_v37 = vld [vmem:[%s3002_s1 + $0x8] sm:$0xff]  ;;  %v87_v41 = vrot.slane %v2341_v38, 1  ;;  %v47_v42 = vld [vmem:[%s3002_s1 + $0x10] sm:$0xff] }
   0xa   :  { %412 = vperm.xlu0 %2173, %v41_v23   ;;  %422 = vperm.xlu1 %2174, %v43_v26   ;;  %v1961_v40 = vpack.c.bf16 %v46_v37, %v45_v36  ;;  %v48_v43 = vld [vmem:[%s3002_s1 + $0x18] sm:$0xff]  ;;  %v49_v48 = vld [vmem:[%s3002_s1 + $0x20] sm:$0xff]  ;;  %v50_v49 = vld [vmem:[%s3002_s1 + $0x28] sm:$0xff]  ;;  %v299_v37 = vrot.slane %v2341_v38, 2 }
   0xb   :  { %v86_v39 = vsel %vm83_vm1, %v84_v34, %v85_v35  ;;  %v2355_v44 = vld [vmem:[%s3004_s0 + $0x18] sm:$0xff]  ;;  %v1964_v45 = vpack.c.bf16 %v48_v43, %v47_v42  ;;  %v88_v46 = vsel %vm83_vm1, %v85_v35, %v87_v41  ;;  %v2371_v50 = vld [vmem:[%s3004_s0 + $0x20] sm:$0xf]  ;;  %v1967_v51 = vpack.c.bf16 %v50_v49, %v49_v48  ;;  %v51_v54 = vld [vmem:[%s3002_s1 + $0x30] sm:$0xff] }
   0xc   :  { %1944 = vmatpush3.bf16.msra.mxu0 %v1943_v11  ;;  %v89_v47 = vrot.slane %v2355_v44, 1  ;;  %v91_v53 = vrot.slane %v2371_v50, 1  ;;  %v52_v55 = vld [vmem:[%s3002_s1 + $0x38] sm:$0xff]  ;;  %v53_v58 = vld [vmem:[%s3002_s1 + $0x40] sm:$0xff]  ;;  %v54_v59 = vld [vmem:[%s3002_s1 + $0x48] sm:$0xff]  ;;  %v296_v34 = vrot.slane %v2322_v31, 2 }
   0xd   :  { %1945 = vmatprep.subr.bf16.mxu0 %v2184_v0  ;;  %v1970_v56 = vpack.c.bf16 %v52_v55, %v51_v54  ;;  %v1973_v60 = vpack.c.bf16 %v54_v59, %v53_v58  ;;  %v55_v61 = vld [vmem:[%s3002_s1 + $0x50] sm:$0xff]  ;;  %v56_v62 = vld [vmem:[%s3002_s1 + $0x58] sm:$0xff]  ;;  %v57_v1 = vld [vmem:[%s3002_s1 + $0x60] sm:$0xff]  ;;  %v297_v35 = vrot.slane %v2327_v32, 2 }
   0xe   :  { %427 = vperm.xlu0 %2173, %v44_v29   ;;  %v90_v52 = vsel %vm83_vm1, %v87_v41, %v89_v47  ;;  %v92_v57 = vsel %vm83_vm1, %v89_v47, %v91_v53  ;;  %v1976_v63 = vpack.c.bf16 %v56_v62, %v55_v61  ;;  %v58_v2 = vld [vmem:[%s3002_s1 + $0x68] sm:$0xff]  ;;  %v59_v5 = vld [vmem:[%s3002_s1 + $0x70] sm:$0xff]  ;;  %v60_v6 = vld [vmem:[%s3002_s1 + $0x78] sm:$0xff] }
   0xf   :  { %v1979_v3 = vpack.c.bf16 %v58_v2, %v57_v1  ;;  %v1982_v7 = vpack.c.bf16 %v60_v6, %v59_v5  ;;  %v1357_v8 = vld [vmem:[%s3002_s1 + $0x100] sm:$0xff]  ;;  %v1358_v9 = vld [vmem:[%s3002_s1 + $0x108] sm:$0xff]  ;;  %v1359_v11 = vld [vmem:[%s3002_s1 + $0x110] sm:$0xff]  ;;  %v298_v36 = vsel %vm295_vm2, %v296_v34, %v297_v35 }
  0x10   :  { %1947 = vmatpush3.bf16.msra.mxu0 %v1946_v14  ;;  %v1985_v10 = vpack.c.bf16 %v1358_v9, %v1357_v8  ;;  %v1360_v12 = vld [vmem:[%s3002_s1 + $0x118] sm:$0xff]  ;;  %v1361_v14 = vld [vmem:[%s3002_s1 + $0x120] sm:$0xff]  ;;  %v1362_v15 = vld [vmem:[%s3002_s1 + $0x128] sm:$0xff] }
  0x11   :  { %1948 = vmatprep.subr.bf16.mxu0 %v2184_v0  ;;  %v1988_v13 = vpack.c.bf16 %v1360_v12, %v1359_v11  ;;  %v1991_v16 = vpack.c.bf16 %v1362_v15, %v1361_v14  ;;  %v1364_v18 = vld [vmem:[%s3002_s1 + $0x138] sm:$0xff]  ;;  %v1365_v20 = vld [vmem:[%s3002_s1 + $0x140] sm:$0xff]  ;;  %v1366_v21 = vld [vmem:[%s3002_s1 + $0x148] sm:$0xff] }
  0x12   :  { %v1367_v23 = vld [vmem:[%s3002_s1 + $0x150] sm:$0xff]  ;;  %v1368_v24 = vld [vmem:[%s3002_s1 + $0x158] sm:$0xff]  ;;  %v1369_v26 = vld [vmem:[%s3002_s1 + $0x160] sm:$0xff] }
  0x13   :  { %v2000_v25 = vpack.c.bf16 %v1368_v24, %v1367_v23  ;;  %v1371_v29 = vld [vmem:[%s3002_s1 + $0x170] sm:$0xff]  ;;  %v1372_v30 = vld [vmem:[%s3002_s1 + $0x178] sm:$0xff]  ;;  %v465_v41 = vld [vmem:[%s3005_s3] sm:$0xff] }
  0x14   :  { %1950 = vmatpush3.bf16.msra.mxu0 %v1949_v17  ;;  %v1363_v17 = vld [vmem:[%s3002_s1 + $0x130] sm:$0xff]  ;;  %v466_v42 = vld [vmem:[%s3005_s3 + $0x8] sm:$0xff]  ;;  %v469_v47 = vld [vmem:[%s3005_s3 + $0x20] sm:$0xff] }
  0x15   :  { %1951 = vmatprep.subr.bf16.mxu0 %v2184_v0  ;;  %v1994_v19 = vpack.c.bf16 %v1364_v18, %v1363_v17  ;;  %v2009_v43 = vpack.c.bf16 %v466_v42, %v465_v41  ;;  %v470_v48 = vld [vmem:[%s3005_s3 + $0x28] sm:$0xff]  ;;  %v477_v59 = vld [vmem:[%s3005_s3 + $0x60] sm:$0xff]  ;;  %v479_v62 = vld [vmem:[%s3005_s3 + $0x70] sm:$0xff] }
  0x16   :  { %v2015_v49 = vpack.c.bf16 %v470_v48, %v469_v47  ;;  %v474_v54 = vld [vmem:[%s3005_s3 + $0x48] sm:$0xff]  ;;  %vm1390_vm7 = vmneg %vm463_vm4 }
  0x17   :  { %2010 = vmatpush3.bf16.msra.mxu1 %v2009_v43 }
  0x18   :  { %1953 = vmatpush3.bf16.msra.mxu0 %v1952_v22  ;;  %v1997_v22 = vpack.c.bf16 %v1366_v21, %v1365_v20  ;;  %2011 = vmatprep.subr.bf16.mxu1 %v2184_v0 }
  0x19   :  { %1954 = vmatprep.subr.bf16.mxu0 %v2184_v0 }
  0x1c   :  { %1956 = vmatpush3.bf16.msra.mxu0 %v1955_v27  ;;  %v1370_v27 = vld [vmem:[%s3002_s1 + $0x168] sm:$0xff] }
  0x1d   :  { %1957 = vmatprep.subr.bf16.mxu0 %v2184_v0  ;;  %v2003_v28 = vpack.c.bf16 %v1370_v27, %v1369_v26 }
  0x20   :  { %1959 = vmatpush3.bf16.msra.mxu0 %v1958_v33  ;;  %v2006_v33 = vpack.c.bf16 %v1372_v30, %v1371_v29 }
  0x21   :  { %1960 = vmatprep.subr.bf16.mxu0 %v2184_v0 }
  0x23   :  { %1607 = vmatmul.mubr.f32.vlgmr.msra.gmra.mrb[0].mxu0 %v86_v39  ;;  %v300_v39 = vsel %vm295_vm2, %v297_v35, %v299_v37 }
  0x24   :  { %1962 = vmatpush3.bf16.msra.mxu0 %v1961_v40  ;;  %1609 = vmatprep.mubr.msk.f32.mxu0 %vm2185_vm0, %v2186_v4  ;;  %v303_v40 = vrot.slane %v2371_v50, 2 }
  0x25   :  { %1963 = vmatprep.subr.bf16.mxu0 %v2184_v0 }
  0x27   :  { %1610 = vmatmul.mubr.f32.gmra.mrb[2].mxu0 %v88_v46 }
  0x28   :  { %1965 = vmatpush3.bf16.msra.mxu0 %v1964_v45  ;;  %1612 = vmatprep.mubr.msk.f32.mxu0 %vm2185_vm0, %v2186_v4  ;;  %v468_v45 = vld [vmem:[%s3005_s3 + $0x18] sm:$0xff] }
  0x29   :  { %1966 = vmatprep.subr.bf16.mxu0 %v2184_v0 }
  0x2b   :  { %1613 = vmatmul.mubr.f32.gmra.mrb[4].mxu0 %v90_v52 }
  0x2c   :  { %1968 = vmatpush3.bf16.msra.mxu0 %v1967_v51  ;;  %1615 = vmatprep.mubr.msk.f32.mxu0 %vm2185_vm0, %v2186_v4  ;;  %v472_v51 = vld [vmem:[%s3005_s3 + $0x38] sm:$0xff] }
  0x2d   :  { %1969 = vmatprep.subr.bf16.mxu0 %v2184_v0 }
  0x2f   :  { %1616 = vmatmul.mubr.f32.gmra.mrb[6].mxu0 %v92_v57  ;;  %v476_v57 = vld [vmem:[%s3005_s3 + $0x58] sm:$0xff] }
  0x30   :  { %1971 = vmatpush3.bf16.msra.mxu0 %v1970_v56  ;;  %1618 = vmatprep.mubr.msk.f32.mxu0 %vm2185_vm0, %v2186_v4  ;;  %v475_v56 = vld [vmem:[%s3005_s3 + $0x50] sm:$0xff] }
  0x31   :  { %1972 = vmatprep.subr.bf16.mxu0 %v2184_v0  ;;  %v2024_v58 = vpack.c.bf16 %v476_v57, %v475_v56 }
  0x33   :  { %1619 = vmatmul.mubr.f32.gmra.mrb[8].mxu0 %v91_v53  ;;  %v473_v53 = vld [vmem:[%s3005_s3 + $0x40] sm:$0xff] }
  0x34   :  { %1974 = vmatpush3.bf16.msra.mxu0 %v1973_v60  ;;  %1653 = vmatprep.mubr.msk.f32.mxu0 %vm2185_vm0, %v2186_v4  ;;  %v2021_v55 = vpack.c.bf16 %v474_v54, %v473_v53  ;;  %v478_v60 = vld [vmem:[%s3005_s3 + $0x68] sm:$0xff] }
  0x35   :  { %1975 = vmatprep.subr.bf16.mxu0 %v2184_v0  ;;  %v2027_v61 = vpack.c.bf16 %v478_v60, %v477_v59  ;;  %v2188_v60 = vmov 1966171168  }
  0x38   :  { %1977 = vmatpush3.bf16.msra.mxu0 %v1976_v63  ;;  %v480_v63 = vld [vmem:[%s3005_s3 + $0x78] sm:$0xff] }
  0x39   :  { %1978 = vmatprep.subr.bf16.mxu0 %v2184_v0  ;;  %v2030_v1 = vpack.c.bf16 %v480_v63, %v479_v62  ;;  %v565_v62 = vlaneseq }
  0x3c   :  { %1980 = vmatpush3.bf16.msra.mxu0 %v1979_v3 }
  0x3d   :  { %1981 = vmatprep.subr.bf16.mxu0 %v2184_v0 }
  0x40   :  { %1983 = vmatpush3.bf16.msra.mxu0 %v1982_v7 }
  0x41   :  { %1984 = vmatprep.subr.bf16.mxu0 %v2184_v0 }
  0x43   :  { %1654 = vmatmul.mubr.f32.vlgmr.msra.gmra.mrb[0].mxu0 %v2322_v31  ;;  %v301_v31 = vrot.slane %v2355_v44, 2 }
  0x44   :  { %1986 = vmatpush3.bf16.msra.mxu0 %v1985_v10  ;;  %1656 = vmatprep.mubr.msk.f32.mxu0 %vm2185_vm0, %v2186_v4 }
  0x45   :  { %1987 = vmatprep.subr.bf16.mxu0 %v2184_v0 }
  0x47   :  { %1657 = vmatmul.mubr.f32.gmra.mrb[2].mxu0 %v2327_v32  ;;  %v302_v32 = vsel %vm295_vm2, %v299_v37, %v301_v31 }
  0x48   :  { %1989 = vmatpush3.bf16.msra.mxu0 %v1988_v13  ;;  %1659 = vmatprep.mubr.msk.f32.mxu0 %vm2185_vm0, %v2186_v4 }
  0x49   :  { %1990 = vmatprep.subr.bf16.mxu0 %v2184_v0 }
  0x4b   :  { %1660 = vmatmul.mubr.f32.gmra.mrb[4].mxu0 %v2341_v38  ;;  %v304_v38 = vsel %vm295_vm2, %v301_v31, %v303_v40 }
  0x4c   :  { %1992 = vmatpush3.bf16.msra.mxu0 %v1991_v16  ;;  %1662 = vmatprep.mubr.msk.f32.mxu0 %vm2185_vm0, %v2186_v4 }
  0x4d   :  { %1993 = vmatprep.subr.bf16.mxu0 %v2184_v0 }
  0x4f   :  { %1663 = vmatmul.mubr.f32.gmra.mrb[6].mxu0 %v2355_v44  ;;  %v467_v44 = vld [vmem:[%s3005_s3 + $0x10] sm:$0xff] }
  0x50   :  { %1995 = vmatpush3.bf16.msra.mxu0 %v1994_v19  ;;  %1665 = vmatprep.mubr.msk.f32.mxu0 %vm2185_vm0, %v2186_v4  ;;  %v2012_v46 = vpack.c.bf16 %v468_v45, %v467_v44 }
  0x51   :  { %1996 = vmatprep.subr.bf16.mxu0 %v2184_v0 }
  0x52   :  { %2013 = vmatpush3.bf16.msra.mxu1 %v2012_v46 }
  0x53   :  { %1666 = vmatmul.mubr.f32.gmra.mrb[8].mxu0 %v2371_v50  ;;  %2014 = vmatprep.subr.bf16.mxu1 %v2184_v0  ;;  %v471_v50 = vld [vmem:[%s3005_s3 + $0x30] sm:$0xff] }
  0x54   :  { %1998 = vmatpush3.bf16.msra.mxu0 %v1997_v22  ;;  %1700 = vmatprep.mubr.msk.f32.mxu0 %vm2185_vm0, %v2186_v4  ;;  %v2018_v52 = vpack.c.bf16 %v472_v51, %v471_v50  ;;  %v2623_v51 = vld [vmem:[%s3006_s4] sm:$0xff] }
  0x55   :  { %1999 = vmatprep.subr.bf16.mxu0 %v2184_v0 }
  0x56   :  { %2016 = vmatpush3.bf16.msra.mxu1 %v2015_v49 }
  0x57   :  { %2017 = vmatprep.subr.bf16.mxu1 %v2184_v0 }
  0x58   :  { %2001 = vmatpush3.bf16.msra.mxu0 %v2000_v25 }
  0x59   :  { %2002 = vmatprep.subr.bf16.mxu0 %v2184_v0 }
  0x5a   :  { %2019 = vmatpush3.bf16.msra.mxu1 %v2018_v52 }
  0x5b   :  { %2020 = vmatprep.subr.bf16.mxu1 %v2184_v0 }
  0x5c   :  { %2004 = vmatpush3.bf16.msra.mxu0 %v2003_v28 }
  0x5d   :  { %2005 = vmatprep.subr.bf16.mxu0 %v2184_v0 }
  0x5e   :  { %2022 = vmatpush3.bf16.msra.mxu1 %v2021_v55 }
  0x5f   :  { %2023 = vmatprep.subr.bf16.mxu1 %v2184_v0 }
  0x60   :  { %2007 = vmatpush3.bf16.msra.mxu0 %v2006_v33 }
  0x61   :  { %2104 = vmatprep.subr.bf16.mxu0 %v2184_v0 }
  0x62   :  { %2025 = vmatpush3.bf16.msra.mxu1 %v2024_v58 }
  0x63   :  { %1701 = vmatmul.mubr.f32.vlgmr.msra.gmra.mrb[0].mxu0 %v298_v36  ;;  %2026 = vmatprep.subr.bf16.mxu1 %v2184_v0 }
  0x64   :  { %1703 = vmatprep.mubr.msk.f32.mxu0 %vm2185_vm0, %v2186_v4  ;;  %2106 = vmatpush3.bf16.msra.mxu0 %v2009_v43 }
  0x65   :  { %2107 = vmatprep.subr.bf16.mxu0 %v2184_v0 }
  0x66   :  { %2028 = vmatpush3.bf16.msra.mxu1 %v2027_v61 }
  0x67   :  { %1704 = vmatmul.mubr.f32.gmra.mrb[2].mxu0 %v300_v39  ;;  %2029 = vmatprep.subr.bf16.mxu1 %v2184_v0 }
  0x68   :  { %1706 = vmatprep.mubr.msk.f32.mxu0 %vm2185_vm0, %v2186_v4  ;;  %2109 = vmatpush3.bf16.msra.mxu0 %v2012_v46 }
  0x69   :  { %2110 = vmatprep.subr.bf16.mxu0 %v2184_v0 }
  0x6a   :  { %2031 = vmatpush3.bf16.msra.mxu1 %v2030_v1 }
  0x6b   :  { %1707 = vmatmul.mubr.f32.gmra.mrb[4].mxu0 %v302_v32  ;;  %1750 = vmatprep.subr.mxu1 %v2186_v4 }
  0x6c   :  { %1709 = vmatprep.mubr.msk.f32.mxu0 %vm2185_vm0, %v2186_v4  ;;  %2112 = vmatpush3.bf16.msra.mxu0 %v2015_v49 }
  0x6d   :  { %2113 = vmatprep.subr.bf16.mxu0 %v2184_v0 }
  0x6f   :  { %1710 = vmatmul.mubr.f32.gmra.mrb[6].mxu0 %v304_v38 }
  0x70   :  { %1712 = vmatprep.mubr.msk.f32.mxu0 %vm2185_vm0, %v2186_v4  ;;  %2115 = vmatpush3.bf16.msra.mxu0 %v2018_v52 }
  0x71   :  { %2116 = vmatprep.subr.bf16.mxu0 %v2184_v0 }
  0x73   :  { %1713 = vmatmul.mubr.f32.gmra.mrb[8].mxu0 %v303_v40 }
  0x74   :  { %1928 = vmatprep.mubr.msk.f32.mxu0 %vm2185_vm0, %v2186_v4  ;;  %2118 = vmatpush3.bf16.msra.mxu0 %v2021_v55 }
  0x75   :  { %2119 = vmatprep.subr.bf16.mxu0 %v2184_v0 }
  0x78   :  { %2121 = vmatpush3.bf16.msra.mxu0 %v2024_v58 }
  0x79   :  { %2122 = vmatprep.subr.bf16.mxu0 %v2184_v0 }
  0x7c   :  { %2124 = vmatpush3.bf16.msra.mxu0 %v2027_v61  ;;  %v563_v61 = vunpack.c.l.s4 %v2188_v60 }
  0x7d   :  { %2125 = vmatprep.subr.bf16.mxu0 %v2184_v0 }
  0x7e   :  { %v564_v63 = vunpack.c.0.s8 %v563_v61 }
  0x80   :  { %2127 = vmatpush3.bf16.msra.mxu0 %v2030_v1  ;;  %v2627_v1 = vshrl.u32 %v565_v62, 7 }
  0x81   :  { %1931 = vmatprep.subr.mxu0 %v2186_v4 }
  0x85   :  { %v2575_v2 = vpop.permute.xlu0 %407  ;;  %v2577_v7 = vpop.permute.xlu1 %417 }
  0x89   :  { %v2579_v8 = vpop.permute.xlu0 %412  ;;  %v2590_v15 = vpop.permute.xlu1 %422 }
  0x8d   :  { %v2603_v24 = vpop.permute.xlu0 %427 }
 0x136   :  { %v376_v3 = vpop.f32.mrb[0].mxu0 }
 0x137   :  { %v1702_v5 = vpop.f32.mrb[1].mxu0  ;;  %v2585_v13 = vmul.f32 %v2575_v2, %v376_v3  ;;  %v2630_v3 = vsub.s32 %v564_v63, %v2627_v1 }
 0x139   :  { %v447_v20 = vmul.f32 %v2585_v13, %v2585_v13 }
 0x13a   :  { %v381_v6 = vpop.f32.mrb[2].mxu0 }
 0x13b   :  { %v1705_v9 = vpop.f32.mrb[3].mxu0  ;;  %v2582_v10 = vmul.f32 %v2579_v8, %v381_v6 }
 0x13d   :  { %v448_v16 = vmul.f32 %v2582_v10, %v2582_v10  ;;  %v435_v21 = vadd.f32 %v2582_v10, %v2585_v13 }
 0x13e   :  { %v386_v11 = vpop.f32.mrb[4].mxu0 }
 0x13f   :  { %v1708_v12 = vpop.f32.mrb[5].mxu0  ;;  %v2588_v14 = vmul.f32 %v2577_v7, %v386_v11  ;;  %v452_v23 = vadd.f32 %v448_v16, %v447_v20  ;;  %v558_v11 = vld [vmem:[%s3007_s6] sm:$0x1]  ;;  %v2641_v20 = vsub.s32 0, %v2627_v1 }
 0x141   :  { %v449_v22 = vmul.f32 %v2588_v14, %v2588_v14  ;;  %v436_v25 = vadd.f32 %v435_v21, %v2588_v14  ;;  %v1374_v21 = vld [vmem:[%s3009_s2 + $0x80] sm:$0xff] }
 0x142   :  { %v391_v17 = vpop.f32.mrb[6].mxu0 }
 0x143   :  { %v2595_v18 = vmul.f32 %v2590_v15, %v391_v17  ;;  %v1711_v19 = vpop.f32.mrb[7].mxu0  ;;  %v453_v30 = vadd.f32 %v452_v23, %v449_v22  ;;  %v579_v17 = vld [vmem:[%s3008_s7] sm:$0x1]  ;;  %v1375_v22 = vld [vmem:[%s3009_s2 + $0x88] sm:$0xff] }
 0x145   :  { %v450_v26 = vmul.f32 %v2595_v18, %v2595_v18  ;;  %v437_v33 = vadd.f32 %v436_v25, %v2595_v18 }
 0x146   :  { %v396_v27 = vpop.f32.mrb[8].mxu0 }
 0x147   :  { %v2609_v28 = vmul.f32 %v2603_v24, %v396_v27  ;;  %v1714_v29 = vpop.f32.mrb[9].mxu0  ;;  %v454_v36 = vadd.f32 %v453_v30, %v450_v26  ;;  %v2033_v26 = vpack.c.bf16 %v1375_v22, %v1374_v21  ;;  %v1376_v27 = vld [vmem:[%s3009_s2 + $0x90] sm:$0xff]  ;;  %v714_v22 = vld [vmem:[%s3009_s2] sm:$0xff] }
 0x148   :  { %v1377_v29 = vld [vmem:[%s3009_s2 + $0x98] sm:$0xff] }
 0x149   :  { %v439_v34 = vsel %vm438_vm3, %v2609_v28, 0.0  ;;  %v451_v35 = vmul.f32 %v2609_v28, %v2609_v28 }
 0x14a   :  { %v440_v37 = vadd.f32 %v439_v34, %v437_v33  ;;  %v2036_v33 = vpack.c.bf16 %v1377_v29, %v1376_v27  ;;  %v1378_v34 = vld [vmem:[%s3009_s2 + $0xa0] sm:$0xff] }
 0x14b   :  { %v455_v39 = vsel %vm438_vm3, %v451_v35, 0.0  ;;  %v1379_v35 = vld [vmem:[%s3009_s2 + $0xa8] sm:$0xff] }
 0x14c   :  { %v441_v31 = vrot.slane %v440_v37, 4  ;;  %v456_v32 = vadd.f32 %v455_v39, %v454_v36  ;;  %v2039_v36 = vpack.c.bf16 %v1379_v35, %v1378_v34  ;;  %v1381_v39 = vld [vmem:[%s3009_s2 + $0xb8] sm:$0xff] }
 0x14e   :  { %v442_v40 = vadd.f32 %v441_v31, %v440_v37  ;;  %v457_v38 = vrot.slane %v456_v32, 4  ;;  %v1380_v37 = vld [vmem:[%s3009_s2 + $0xb0] sm:$0xff] }
 0x14f   :  { %v2042_v31 = vpack.c.bf16 %v1381_v39, %v1380_v37 }
 0x150   :  { %v443_v41 = vrot.slane %v442_v40, 2  ;;  %v458_v42 = vadd.f32 %v457_v38, %v456_v32  ;;  %v1382_v32 = vld [vmem:[%s3009_s2 + $0xc0] sm:$0xff] }
 0x152   :  { %v444_v43 = vadd.f32 %v443_v41, %v442_v40  ;;  %v459_v44 = vrot.slane %v458_v42, 2  ;;  %v1383_v40 = vld [vmem:[%s3009_s2 + $0xc8] sm:$0xff]  ;;  %v1384_v41 = vld [vmem:[%s3009_s2 + $0xd0] sm:$0xff] }
 0x153   :  { %v2045_v38 = vpack.c.bf16 %v1383_v40, %v1382_v32  ;;  %v717_v32 = vld [vmem:[%s3009_s2 + $0x18] sm:$0xff] }
 0x154   :  { %v445_v45 = vrot.slane %v444_v43, 1  ;;  %v460_v46 = vadd.f32 %v459_v44, %v458_v42  ;;  %v1385_v42 = vld [vmem:[%s3009_s2 + $0xd8] sm:$0xff]  ;;  %v1386_v44 = vld [vmem:[%s3009_s2 + $0xe0] sm:$0xff] }
 0x156   :  { %v461_v47 = vrot.slane %v460_v46, 1  ;;  %v446_v48 = vadd.f32 %v445_v45, %v444_v43  ;;  %v2048_v43 = vpack.c.bf16 %v1385_v42, %v1384_v41  ;;  %v1387_v45 = vld [vmem:[%s3009_s2 + $0xe8] sm:$0xff] }
 0x158   :  { %v462_v49 = vadd.f32 %v461_v47, %v460_v46  ;;  %v2051_v46 = vpack.c.bf16 %v1387_v45, %v1386_v44  ;;  %v1388_v47 = vld [vmem:[%s3009_s2 + $0xf0] sm:$0xff] }
 0x15a   :  { %v464_v50 = vsel %vm463_vm4, %v446_v48, %v462_v49  ;;  %v1389_v48 = vld [vmem:[%s3009_s2 + $0xf8] sm:$0xff] }
 0x15b   :  { %1748 = vmatmul.mubr.f32.vlgmr.msra.gmra.mrb[0].mxu1 %v464_v50  ;;  %v2054_v49 = vpack.c.bf16 %v1389_v48, %v1388_v47  ;;  %v675_v50 = vsub.s32 1, %v2627_v1 }
 0x15c   :  { %1752 = vmatprep.mubr.msk.f32.mxu1 %vm2185_vm0, %v2186_v4  ;;  %1751 = vmatpush3.msra.mxu1 %v2623_v51 }
 0x15d   :  { %2032 = vmatprep.subr.bf16.mxu1 %v2184_v0 }
 0x22e   :  { %v547_v52 = vpop.f32.mrb[0].mxu1 }
 0x22f   :  { %v551_v53 = vmul.f32 0.001953125, %v547_v52  ;;  %v1749_v54 = vpop.f32.mrb[1].mxu1 }
 0x231   :  { %v552_v55 = vmul.f32 %v551_v53, %v551_v53 }
 0x233   :  { %v554_v56 = vrot.slane %v552_v55, 7 }
 0x235   :  { %v556_v57 = vsub.f32 %v551_v53, %v554_v56 }
 0x237   :  { %v557_v58 = vmax.f32 %v556_v57, 0.0 }
 0x239   :  { %v559_v59 = vadd.f32 1e-05, %v557_v58 }
 0x23b   :  { %2175 = vrsqrt.f32 %v559_v59 }
 0x245   :  { %v2176_v5 = vpop.eup %2175 }
 0x246   :  { %v568_v6 = vrot.slane %v2176_v5, %v2630_v3 }
 0x248   :  { %v569_v9 = vcombine.high %v568_v6, %v568_v6 }
 0x24a   :  { %v576_v12 = vrot.slane %v569_v9, %v2630_v3 }
 0x24c   :  { %v578_v16 = vmul.f32 %v576_v12, %v558_v11 }
 0x24e   :  { %v580_v19 = vmul.f32 %v578_v16, %v551_v53 }
 0x250   :  { %v581_v23 = vsub.f32 %v579_v17, %v580_v19 }
 0x252   :  { %v586_v25 = vrot.slane %v581_v23, %v2641_v20  ;;  %v715_v23 = vld [vmem:[%s3009_s2 + $0x8] sm:$0xff] }
 0x253   :  { %v2057_v39 = vpack.c.bf16 %v715_v23, %v714_v22  ;;  %v1393_v22 = vld [vmem:[%s3009_s2 + $0x100] sm:$0xff]  ;;  %v1394_v23 = vld [vmem:[%s3009_s2 + $0x108] sm:$0xff] }
 0x254   :  { %v588_v30 = vsel %vm463_vm4, %v578_v16, %v586_v25 }
 0x255   :  { %1753 = vmatmul.mubr.msk.f32.vlgmr.msra.gmra.mrb[2].mxu1 %vm590_vm5, %v588_v30 }
 0x256   :  { %2034 = vmatpush3.bf16.msra.mxu1 %v2033_v26  ;;  %1787 = vmatprep.mubr.msk.f32.mxu1 %vm2185_vm0, %v2186_v4 }
 0x257   :  { %2035 = vmatprep.subr.bf16.mxu1 %v2184_v0 }
 0x25a   :  { %2037 = vmatpush3.bf16.msra.mxu1 %v2036_v33 }
 0x25b   :  { %2038 = vmatprep.subr.bf16.mxu1 %v2184_v0 }
 0x25e   :  { %2040 = vmatpush3.bf16.msra.mxu1 %v2039_v36 }
 0x25f   :  { %2041 = vmatprep.subr.bf16.mxu1 %v2184_v0 }
 0x262   :  { %2043 = vmatpush3.bf16.msra.mxu1 %v2042_v31  ;;  %v716_v31 = vld [vmem:[%s3009_s2 + $0x10] sm:$0xff] }
 0x263   :  { %2044 = vmatprep.subr.bf16.mxu1 %v2184_v0  ;;  %v2060_v48 = vpack.c.bf16 %v717_v32, %v716_v31  ;;  %v1401_v31 = vld [vmem:[%s3009_s2 + $0x140] sm:$0xff]  ;;  %v1402_v32 = vld [vmem:[%s3009_s2 + $0x148] sm:$0xff] }
 0x266   :  { %2046 = vmatpush3.bf16.msra.mxu1 %v2045_v38 }
 0x267   :  { %2047 = vmatprep.subr.bf16.mxu1 %v2184_v0 }
 0x26a   :  { %2049 = vmatpush3.bf16.msra.mxu1 %v2048_v43 }
 0x26b   :  { %2050 = vmatprep.subr.bf16.mxu1 %v2184_v0 }
 0x26e   :  { %2052 = vmatpush3.bf16.msra.mxu1 %v2051_v46 }
 0x26f   :  { %2053 = vmatprep.subr.bf16.mxu1 %v2184_v0 }
 0x272   :  { %2055 = vmatpush3.bf16.msra.mxu1 %v2054_v49 }
 0x273   :  { %2056 = vmatprep.subr.bf16.mxu1 %v2184_v0 }
 0x328   :  { %v660_v52 = vpop.f32.mrb[2].mxu1 }
 0x329   :  { %v667_v53 = vrot.slane %v660_v52, %v2641_v20  ;;  %v1754_v54 = vpop.f32.mrb[3].mxu1  ;;  %v676_v55 = vrot.slane %v660_v52, %v675_v50 }
 0x32a   :  { %v719_v54 = vld [vmem:[%s3009_s2 + $0x28] sm:$0xff] }
 0x32b   :  { %v668_v56 = vmul.f32 %v667_v53, %v2585_v13  ;;  %v669_v57 = vmul.f32 %v667_v53, %v2582_v10  ;;  %v670_v58 = vmul.f32 %v667_v53, %v2588_v14  ;;  %v671_v59 = vmul.f32 %v667_v53, %v2595_v18 }
 0x32c   :  { %v672_v60 = vmul.f32 %v667_v53, %v2609_v28  ;;  %v718_v53 = vld [vmem:[%s3009_s2 + $0x20] sm:$0xff] }
 0x32d   :  { %v677_v61 = vadd.f32 %v676_v55, %v668_v56  ;;  %v678_v62 = vadd.f32 %v676_v55, %v669_v57  ;;  %v679_v63 = vadd.f32 %v676_v55, %v670_v58  ;;  %v680_v5 = vadd.f32 %v676_v55, %v671_v59  ;;  %v720_v59 = vld [vmem:[%s3009_s2 + $0x30] sm:$0xff] }
 0x32e   :  { %v681_v6 = vadd.f32 %v676_v55, %v672_v60  ;;  %v2063_v58 = vpack.c.bf16 %v719_v54, %v718_v53  ;;  %v721_v60 = vld [vmem:[%s3009_s2 + $0x38] sm:$0xff] }
 0x32f   :  { %v682_v9 = vmax.f32 %v677_v61, 0.0  ;;  %v683_v11 = vmax.f32 %v678_v62, 0.0  ;;  %v684_v12 = vmax.f32 %v679_v63, 0.0  ;;  %v685_v16 = vmax.f32 %v680_v5, 0.0  ;;  %v722_v5 = vld [vmem:[%s3009_s2 + $0x40] sm:$0xff] }
 0x330   :  { %v686_v17 = vmax.f32 %v681_v6, 0.0  ;;  %v2066_v63 = vpack.c.bf16 %v721_v60, %v720_v59  ;;  %v723_v6 = vld [vmem:[%s3009_s2 + $0x48] sm:$0xff] }
 0x331   :  { %v687_v13 = vmul.f32 %v682_v9, %v2575_v2  ;;  %v688_v10 = vmul.f32 %v683_v11, %v2579_v8  ;;  %v689_v14 = vmul.f32 %v684_v12, %v2577_v7  ;;  %v690_v18 = vmul.f32 %v685_v16, %v2590_v15  ;;  %v724_v12 = vld [vmem:[%s3009_s2 + $0x50] sm:$0xff]  ;;  %v725_v16 = vld [vmem:[%s3009_s2 + $0x58] sm:$0xff] }
 0x332   :  { %v691_v28 = vmul.f32 %v686_v17, %v2603_v24  ;;  %v2069_v11 = vpack.c.bf16 %v723_v6, %v722_v5  ;;  %v2072_v17 = vpack.c.bf16 %v725_v16, %v724_v12 }
 0x333   :  { %v2718_v19 = vrot.slane %v687_v13, 7  ;;  %v698_v21 = vrot.slane %v688_v10, 7  ;;  %v700_v25 = vrot.slane %v689_v14, 7  ;;  %v702_v26 = vrot.slane %v690_v18, 7  ;;  %v726_v13 = vld [vmem:[%s3009_s2 + $0x60] sm:$0xff]  ;;  %v727_v10 = vld [vmem:[%s3009_s2 + $0x68] sm:$0xff] }
 0x334   :  { %v704_v27 = vrot.slane %v691_v28, 7  ;;  %v2075_v14 = vpack.c.bf16 %v727_v10, %v726_v13  ;;  %v728_v18 = vld [vmem:[%s3009_s2 + $0x70] sm:$0xff]  ;;  %v729_v28 = vld [vmem:[%s3009_s2 + $0x78] sm:$0xff] }
 0x335   :  { %v2728_v29 = vsel %vm463_vm4, %v2718_v19, %v698_v21  ;;  %v711_v30 = vsel %vm463_vm4, 0.0, %v2718_v19  ;;  %v2733_v33 = vsel %vm463_vm4, %v698_v21, %v700_v25  ;;  %v2736_v34 = vsel %vm463_vm4, %v700_v25, %v702_v26 }
 0x336   :  { %v749_v35 = vrot.slane %v711_v30, 1  ;;  %v750_v36 = vrot.slane %v2728_v29, 1  ;;  %v960_v37 = vrot.slane %v711_v30, 2  ;;  %v2746_v40 = vsel %vm463_vm4, %v702_v26, %v704_v27  ;;  %v1395_v26 = vld [vmem:[%s3009_s2 + $0x110] sm:$0xff]  ;;  %v1396_v27 = vld [vmem:[%s3009_s2 + $0x118] sm:$0xff] }
 0x337   :  { %v961_v38 = vrot.slane %v2728_v29, 2  ;;  %v963_v41 = vrot.slane %v2733_v33, 2  ;;  %v752_v43 = vrot.slane %v2733_v33, 1  ;;  %v2754_v44 = vsel %vm712_vm6, %v2746_v40, 0.0 }
 0x338   :  { %v751_v42 = vsel %vm83_vm1, %v749_v35, %v750_v36  ;;  %v965_v45 = vrot.slane %v2736_v34, 2  ;;  %v967_v52 = vrot.slane %v2754_v44, 2  ;;  %v754_v56 = vrot.slane %v2736_v34, 1  ;;  %v1397_v35 = vld [vmem:[%s3009_s2 + $0x120] sm:$0xff] }
 0x339   :  { %1788 = vmatmul.mubr.f32.vlgmr.msra.gmra.mrb[4].mxu1 %v751_v42  ;;  %v2758_v46 = vsel %vm295_vm2, %v960_v37, %v961_v38  ;;  %v2761_v47 = vsel %vm295_vm2, %v961_v38, %v963_v41  ;;  %v753_v55 = vsel %vm83_vm1, %v750_v36, %v752_v43  ;;  %v756_v62 = vrot.slane %v2754_v44, 1  ;;  %v1398_v36 = vld [vmem:[%s3009_s2 + $0x128] sm:$0xff]  ;;  %v1399_v37 = vld [vmem:[%s3009_s2 + $0x130] sm:$0xff]  ;;  %v1405_v42 = vld [vmem:[%s3009_s2 + $0x160] sm:$0xff] }
 0x33a   :  { %2058 = vmatpush3.bf16.msra.mxu1 %v2057_v39  ;;  %1790 = vmatprep.mubr.msk.f32.mxu1 %vm2185_vm0, %v2186_v4  ;;  %v2766_v49 = vsel %vm295_vm2, %v963_v41, %v965_v45  ;;  %v2781_v57 = vsel %vm295_vm2, %v965_v45, %v967_v52  ;;  %v755_v61 = vsel %vm83_vm1, %v752_v43, %v754_v56  ;;  %v1400_v39 = vld [vmem:[%s3009_s2 + $0x138] sm:$0xff]  ;;  %v1403_v38 = vld [vmem:[%s3009_s2 + $0x150] sm:$0xff]  ;;  %v1406_v43 = vld [vmem:[%s3009_s2 + $0x168] sm:$0xff] }
 0x33b   :  { %2059 = vmatprep.subr.bf16.mxu1 %v2184_v0  ;;  %v757_v9 = vsel %vm83_vm1, %v754_v56, %v756_v62  ;;  %v2078_v21 = vpack.c.bf16 %v729_v28, %v728_v18  ;;  %v2081_v25 = vpack.c.bf16 %v1394_v23, %v1393_v22  ;;  %v2084_v30 = vpack.c.bf16 %v1396_v27, %v1395_v26  ;;  %v1404_v41 = vld [vmem:[%s3009_s2 + $0x158] sm:$0xff] }
 0x33c   :  { %v2099_v45 = vpack.c.bf16 %v1406_v43, %v1405_v42 }
 0x33d   :  { %1791 = vmatmul.mubr.f32.gmra.mrb[6].mxu1 %v753_v55 }
 0x33e   :  { %2061 = vmatpush3.bf16.msra.mxu1 %v2060_v48  ;;  %1793 = vmatprep.mubr.msk.f32.mxu1 %vm2185_vm0, %v2186_v4  ;;  %v1408_v48 = vld [vmem:[%s3009_s2 + $0x178] sm:$0xff] }
 0x33f   :  { %2062 = vmatprep.subr.bf16.mxu1 %v2184_v0 }
 0x341   :  { %1794 = vmatmul.mubr.f32.gmra.mrb[8].mxu1 %v755_v61 }
 0x342   :  { %2064 = vmatpush3.bf16.msra.mxu1 %v2063_v58  ;;  %1796 = vmatprep.mubr.msk.f32.mxu1 %vm2185_vm0, %v2186_v4 }
 0x343   :  { %2065 = vmatprep.subr.bf16.mxu1 %v2184_v0 }
 0x345   :  { %1797 = vmatmul.mubr.f32.gmra.mrb[10].mxu1 %v757_v9 }
 0x346   :  { %2067 = vmatpush3.bf16.msra.mxu1 %v2066_v63  ;;  %1799 = vmatprep.mubr.msk.f32.mxu1 %vm2185_vm0, %v2186_v4 }
 0x347   :  { %2068 = vmatprep.subr.bf16.mxu1 %v2184_v0 }
 0x349   :  { %1800 = vmatmul.mubr.f32.gmra.mrb[12].mxu1 %v756_v62 }
 0x34a   :  { %2070 = vmatpush3.bf16.msra.mxu1 %v2069_v11  ;;  %1834 = vmatprep.mubr.msk.f32.mxu1 %vm2185_vm0, %v2186_v4 }
 0x34b   :  { %2071 = vmatprep.subr.bf16.mxu1 %v2184_v0 }
 0x34e   :  { %2073 = vmatpush3.bf16.msra.mxu1 %v2072_v17 }
 0x34f   :  { %2074 = vmatprep.subr.bf16.mxu1 %v2184_v0 }
 0x352   :  { %2076 = vmatpush3.bf16.msra.mxu1 %v2075_v14 }
 0x353   :  { %2077 = vmatprep.subr.bf16.mxu1 %v2184_v0 }
 0x356   :  { %2079 = vmatpush3.bf16.msra.mxu1 %v2078_v21 }
 0x357   :  { %2080 = vmatprep.subr.bf16.mxu1 %v2184_v0 }
 0x359   :  { %1835 = vmatmul.mubr.msk.f32.vlgmr.msra.gmra.mrb[4].mxu1 %vm1390_vm7, %v2718_v19  ;;  %v2087_v19 = vpack.c.bf16 %v1398_v36, %v1397_v35 }
 0x35a   :  { %2082 = vmatpush3.bf16.msra.mxu1 %v2081_v25  ;;  %1837 = vmatprep.mubr.msk.f32.mxu1 %vm2185_vm0, %v2186_v4 }
 0x35b   :  { %2083 = vmatprep.subr.bf16.mxu1 %v2184_v0 }
 0x35d   :  { %1838 = vmatmul.mubr.f32.gmra.mrb[6].mxu1 %v2728_v29  ;;  %v2090_v29 = vpack.c.bf16 %v1400_v39, %v1399_v37 }
 0x35e   :  { %2085 = vmatpush3.bf16.msra.mxu1 %v2084_v30  ;;  %1840 = vmatprep.mubr.msk.f32.mxu1 %vm2185_vm0, %v2186_v4 }
 0x35f   :  { %2086 = vmatprep.subr.bf16.mxu1 %v2184_v0 }
 0x361   :  { %1841 = vmatmul.mubr.f32.gmra.mrb[8].mxu1 %v2733_v33  ;;  %v2093_v33 = vpack.c.bf16 %v1402_v32, %v1401_v31 }
 0x362   :  { %2088 = vmatpush3.bf16.msra.mxu1 %v2087_v19  ;;  %1843 = vmatprep.mubr.msk.f32.mxu1 %vm2185_vm0, %v2186_v4 }
 0x363   :  { %2089 = vmatprep.subr.bf16.mxu1 %v2184_v0 }
 0x365   :  { %1844 = vmatmul.mubr.f32.gmra.mrb[10].mxu1 %v2736_v34  ;;  %v2096_v34 = vpack.c.bf16 %v1404_v41, %v1403_v38 }
 0x366   :  { %2091 = vmatpush3.bf16.msra.mxu1 %v2090_v29  ;;  %1846 = vmatprep.mubr.msk.f32.mxu1 %vm2185_vm0, %v2186_v4 }
 0x367   :  { %2092 = vmatprep.subr.bf16.mxu1 %v2184_v0 }
 0x369   :  { %1847 = vmatmul.mubr.msk.f32.gmra.mrb[12].mxu1 %vm712_vm6, %v2746_v40  ;;  %v1407_v40 = vld [vmem:[%s3009_s2 + $0x170] sm:$0xff] }
 0x36a   :  { %2094 = vmatpush3.bf16.msra.mxu1 %v2093_v33  ;;  %1881 = vmatprep.mubr.msk.f32.mxu1 %vm2185_vm0, %v2186_v4  ;;  %v2102_v53 = vpack.c.bf16 %v1408_v48, %v1407_v40  ;;  %v1200_v40 = vld [vmem:[%s3011_s9] sm:$0x1] }
 0x36b   :  { %2095 = vmatprep.subr.bf16.mxu1 %v2184_v0 }
 0x36e   :  { %2097 = vmatpush3.bf16.msra.mxu1 %v2096_v34 }
 0x36f   :  { %2098 = vmatprep.subr.bf16.mxu1 %v2184_v0 }
 0x372   :  { %2100 = vmatpush3.bf16.msra.mxu1 %v2099_v45 }
 0x373   :  { %2101 = vmatprep.subr.bf16.mxu1 %v2184_v0 }
 0x376   :  { %2103 = vmatpush3.bf16.msra.mxu1 %v2102_v53 }
 0x379   :  { %1882 = vmatmul.mubr.f32.vlgmr.msra.gmra.mrb[4].mxu1 %v2758_v46 }
 0x37a   :  { %1884 = vmatprep.mubr.msk.f32.mxu1 %vm2185_vm0, %v2186_v4 }
 0x37d   :  { %1885 = vmatmul.mubr.f32.gmra.mrb[6].mxu1 %v2761_v47 }
 0x37e   :  { %1887 = vmatprep.mubr.msk.f32.mxu1 %vm2185_vm0, %v2186_v4 }
 0x381   :  { %1888 = vmatmul.mubr.f32.gmra.mrb[8].mxu1 %v2766_v49 }
 0x382   :  { %1890 = vmatprep.mubr.msk.f32.mxu1 %vm2185_vm0, %v2186_v4 }
 0x385   :  { %1891 = vmatmul.mubr.f32.gmra.mrb[10].mxu1 %v2781_v57 }
 0x386   :  { %1893 = vmatprep.mubr.msk.f32.mxu1 %vm2185_vm0, %v2186_v4 }
 0x389   :  { %1894 = vmatmul.mubr.f32.gmra.mrb[12].mxu1 %v967_v52 }
 0x44c   :  { %v1040_v0 = vpop.f32.mrb[4].mxu1 }
 0x44d   :  { %v1883_v46 = vpop.f32.mrb[5].mxu1  ;;  %v2921_v58 = vmul.f32 %v1040_v0, %v2575_v2 }
 0x450   :  { %v1045_v54 = vpop.f32.mrb[6].mxu1 }
 0x451   :  { %v1886_v47 = vpop.f32.mrb[7].mxu1  ;;  %v2918_v55 = vmul.f32 %v1045_v54, %v2579_v8  ;;  %v1085_v8 = vmul.f32 %v2921_v58, %v2921_v58 }
 0x453   :  { %v1086_v59 = vmul.f32 %v2918_v55, %v2918_v55  ;;  %v1074_v61 = vadd.f32 %v2918_v55, %v2921_v58 }
 0x454   :  { %v1050_v56 = vpop.f32.mrb[8].mxu1 }
 0x455   :  { %v1889_v49 = vpop.f32.mrb[9].mxu1  ;;  %v2924_v57 = vmul.f32 %v1050_v56, %v2577_v7  ;;  %v1090_v62 = vadd.f32 %v1086_v59, %v1085_v8 }
 0x457   :  { %v1087_v2 = vmul.f32 %v2924_v57, %v2924_v57  ;;  %v1075_v7 = vadd.f32 %v1074_v61, %v2924_v57 }
 0x458   :  { %v1055_v44 = vpop.f32.mrb[10].mxu1 }
 0x459   :  { %v2929_v52 = vmul.f32 %v1055_v44, %v2590_v15  ;;  %v1892_v60 = vpop.f32.mrb[11].mxu1  ;;  %v1091_v9 = vadd.f32 %v1090_v62, %v1087_v2 }
 0x45b   :  { %v1088_v63 = vmul.f32 %v2929_v52, %v2929_v52  ;;  %v1076_v11 = vadd.f32 %v1075_v7, %v2929_v52 }
 0x45c   :  { %v1060_v5 = vpop.f32.mrb[12].mxu1 }
 0x45d   :  { %v1073_v15 = vmul.f32 %v1060_v5, %v2603_v24  ;;  %v1895_v6 = vpop.f32.mrb[13].mxu1  ;;  %v1092_v17 = vadd.f32 %v1091_v9, %v1088_v63 }
 0x45f   :  { %v1077_v12 = vsel %vm438_vm3, %v1073_v15, 0.0  ;;  %v1089_v16 = vmul.f32 %v1073_v15, %v1073_v15 }
 0x460   :  { %v1078_v13 = vadd.f32 %v1077_v12, %v1076_v11  ;;  %v2180_v11 = vld [vmem:[%s3004_s0 + $0x8] sm:$0xff] }
 0x461   :  { %v1093_v10 = vsel %vm438_vm3, %v1089_v16, 0.0  ;;  %v2181_v16 = vld [vmem:[%s3004_s0 + $0x10] sm:$0xff] }
 0x462   :  { %v1079_v14 = vrot.slane %v1078_v13, 4  ;;  %v1094_v18 = vadd.f32 %v1093_v10, %v1092_v17 }
 0x464   :  { %v1080_v28 = vadd.f32 %v1079_v14, %v1078_v13  ;;  %v1095_v21 = vrot.slane %v1094_v18, 4  ;;  %v2182_v13 = vld [vmem:[%s3004_s0 + $0x18] sm:$0xff]  ;;  %v2183_v14 = vld [vmem:[%s3004_s0 + $0x20] sm:$0xf] }
 0x466   :  { %v1081_v22 = vrot.slane %v1080_v28, 2  ;;  %v1096_v23 = vadd.f32 %v1095_v21, %v1094_v18 }
 0x468   :  { %v1082_v25 = vadd.f32 %v1081_v22, %v1080_v28  ;;  %v1097_v26 = vrot.slane %v1096_v23, 2 }
 0x46a   :  { %v1083_v24 = vrot.slane %v1082_v25, 1  ;;  %v1098_v27 = vadd.f32 %v1097_v26, %v1096_v23 }
 0x46c   :  { %v1099_v30 = vrot.slane %v1098_v27, 1  ;;  %v1084_v35 = vadd.f32 %v1083_v24, %v1082_v25 }
 0x46e   :  { %v1100_v36 = vadd.f32 %v1099_v30, %v1098_v27 }
 0x470   :  { %v1101_v19 = vsel %vm463_vm4, %v1084_v35, %v1100_v36 }
 0x471   :  { %1929 = vmatmul.mubr.f32.vlgmr.msra.gmra.mrb[10].mxu0 %v1101_v19 }
 0x472   :  { %1932 = vmatpush3.msra.mxu0 %v2623_v51  ;;  %1933 = vmatprep.mubr.msk.f32.mxu0 %vm2185_vm0, %v2186_v4  ;;  %v1179_v51 = vld [vmem:[%s3010_s8] sm:$0x1] }
 0x544   :  { %v1168_v37 = vpop.f32.mrb[10].mxu0 }
 0x545   :  { %v1172_v39 = vmul.f32 0.001953125, %v1168_v37  ;;  %v1930_v29 = vpop.f32.mrb[11].mxu0 }
 0x547   :  { %v1173_v31 = vmul.f32 %v1172_v39, %v1172_v39 }
 0x549   :  { %v1175_v32 = vrot.slane %v1173_v31, 7 }
 0x54b   :  { %v1177_v33 = vsub.f32 %v1172_v39, %v1175_v32 }
 0x54d   :  { %v1178_v38 = vmax.f32 %v1177_v33, 0.0 }
 0x54f   :  { %v1180_v41 = vadd.f32 1e-05, %v1178_v38 }
 0x551   :  { %2177 = vrsqrt.f32 %v1180_v41 }
 0x55b   :  { %v2178_v34 = vpop.eup %2177 }
 0x55c   :  { %v1189_v42 = vrot.slane %v2178_v34, %v2630_v3 }
 0x55e   :  { %v1190_v43 = vcombine.high %v1189_v42, %v1189_v42 }
 0x560   :  { %v1197_v45 = vrot.slane %v1190_v43, %v2630_v3 }
 0x562   :  { %v1199_v4 = vmul.f32 %v1197_v45, %v1179_v51 }
 0x564   :  { %v1201_v48 = vmul.f32 %v1199_v4, %v1172_v39 }
 0x566   :  { %v1202_v53 = vsub.f32 %v1200_v40, %v1201_v48 }
 0x568   :  { %v1207_v0 = vrot.slane %v1202_v53, %v2641_v20 }
 0x56a   :  { %v1209_v46 = vsel %vm463_vm4, %v1199_v4, %v1207_v0 }
 0x56b   :  { %1934 = vmatmul.mubr.msk.f32.vlgmr.msra.gmra.mrb[12].mxu0 %vm590_vm5, %v1209_v46 }
 0x63e   :  { %v1279_v54 = vpop.f32.mrb[12].mxu0 }
 0x63f   :  { %v1286_v47 = vrot.slane %v1279_v54, %v2641_v20  ;;  %v1935_v56 = vpop.f32.mrb[13].mxu0  ;;  %v1295_v3 = vrot.slane %v1279_v54, %v675_v50 }
 0x641   :  { %v1287_v49 = vmul.f32 %v1286_v47, %v2921_v58  ;;  %v1288_v59 = vmul.f32 %v1286_v47, %v2918_v55  ;;  %v1289_v44 = vmul.f32 %v1286_v47, %v2924_v57  ;;  %v1290_v60 = vmul.f32 %v1286_v47, %v2929_v52  ;;  %v2179_v57 = vld [vmem:[%s3004_s0] sm:$0xff] }
 0x642   :  { %v1291_v8 = vmul.f32 %v1286_v47, %v1073_v15 }
 0x643   :  { %v1296_v61 = vadd.f32 %v1295_v3, %v1287_v49  ;;  %v1297_v2 = vadd.f32 %v1295_v3, %v1288_v59  ;;  %v1298_v62 = vadd.f32 %v1295_v3, %v1289_v44  ;;  %v1299_v7 = vadd.f32 %v1295_v3, %v1290_v60 }
 0x644   :  { %v1300_v63 = vadd.f32 %v1295_v3, %v1291_v8 }
 0x645   :  { %v1306_v5 = vrot.slane %v1296_v61, 7  ;;  %v1307_v20 = vrot.slane %v1297_v2, 7  ;;  %v1309_v6 = vrot.slane %v1298_v62, 7  ;;  %v1311_v9 = vrot.slane %v1299_v7, 7 }
 0x646   :  { %v1313_v1 = vrot.slane %v1300_v63, 7 }
 0x647   :  { %v1308_v50 = vsel %vm463_vm4, %v1306_v5, %v1307_v20  ;;  %v1310_v58 = vsel %vm463_vm4, %v1307_v20, %v1309_v6  ;;  %v1312_v55 = vsel %vm463_vm4, %v1309_v6, %v1311_v9  ;;  %v1320_v52 = vadd.f32 %v2179_v57, %v1306_v5 }
 0x648   :  { %v1314_v15 = vsel %vm463_vm4, %v1311_v9, %v1313_v1  ;;  %v1321_v12 = vadd.f32 %v2180_v11, %v1308_v50  ;;  %v1322_v17 = vadd.f32 %v2181_v16, %v1310_v58  ;;  %v1323_v10 = vadd.f32 %v2182_v13, %v1312_v55 }
 0x649   :  { %v1324_v18 = vadd.f32 %v2183_v14, %v1314_v15  ;;  %v1325_v28 = vmax.f32 %v1320_v52, 0.0 }
 0x64a   :  { %v1326_v21 = vmax.f32 %v1321_v12, 0.0  ;;  %v1327_v22 = vmax.f32 %v1322_v17, 0.0  ;;  %v1328_v23 = vmax.f32 %v1323_v10, 0.0 }
 0x64b   :  { %v1329_v25 = vmax.f32 %v1324_v18, 0.0  ;;  %v1330_v26 = vsel %vm463_vm4, 0.0, %v1325_v28 }
 0x64c   :  { %1332 = vst [vmem:[%s3012_s10] sm:$0xff] %v1330_v26  ;;  %1333 = vst [vmem:[%s3012_s10 + $0x8] sm:$0xff] %v1326_v21 }
 0x64d   :  { %1334 = vst [vmem:[%s3012_s10 + $0x10] sm:$0xff] %v1327_v22  ;;  %1335 = vst [vmem:[%s3012_s10 + $0x18] sm:$0xff] %v1328_v23  ;;  %v1331_v24 = vsel %vm712_vm6, %v1329_v25, 0.0 }
 0x64e   :  { %1336 = vst [vmem:[%s3012_s10 + $0x20] sm:$0xf] %v1331_v24 }

</bundles_post_ra>
